<compile_context>
chip_gen: v7x
topology: tpu7x:2x2x1
jax: 0.10.0
libtpu: 0.0.40
codegen_flags: <defaults>
</compile_context>

<pallas_src>
import numpy as np

import jax
import jax.numpy as jnp
from jax.experimental import pallas as pl
from jax.experimental.pallas import tpu as pltpu

_CompilerParams = getattr(pltpu, "CompilerParams", None)
if _CompilerParams is None:  # older jax naming
    _CompilerParams = pltpu.TPUCompilerParams
_HAS_BUFFERED = hasattr(pl, "Buffered")


# ----------------------------------------------------------------------------
# helpers
# ----------------------------------------------------------------------------
def _round_up(v, m):
    return v + (-v % m)


def _nbytes(shape, dtype):
    return int(np.prod(shape)) * jnp.dtype(dtype).itemsize


def _pad2d(a, rows, cols, dtype):
    r, c = a.shape
    if (r, c) == (rows, cols) and a.dtype == jnp.dtype(dtype):
        return a
    return jnp.zeros((rows, cols), dtype).at[:r, :c].set(a.astype(dtype))


def _vmem_limit(resident_bytes, *, headroom=1.25, floor=32 << 20, ceil=96 << 20):
    return int(min(max(resident_bytes * headroom, floor), ceil))


def _const_spec(shape, use_buffered):
    # Block index is constant across the grid: the tile is DMA'd once and
    # stays resident, so a single buffer suffices (no double-buffering).
    if use_buffered:
        return pl.BlockSpec(shape, lambda i: (0, 0), pipeline_mode=pl.Buffered(1))
    return pl.BlockSpec(shape, lambda i: (0, 0))


def _row_spec(shape):
    return pl.BlockSpec(shape, lambda i: (i, 0))


# ----------------------------------------------------------------------------
# kernels
# ----------------------------------------------------------------------------
def _fused_gcn_kernel(x_ref, w_ref, adj_ref, o_ref, h_ref):
    # Step 0: feature transform into a persistent VMEM scratch (f32 MXU
    # accumulation, stored in compute dtype so the aggregation matmul also
    # runs at bf16 MXU rate).  Keep h in f32 instead if accuracy ever matters
    # more than the 2x VMEM / MXU-rate win.
    @pl.when(pl.program_id(0) == 0)
    def _():
        h_ref[...] = jnp.dot(
            x_ref[...], w_ref[...], preferred_element_type=jnp.float32
        ).astype(h_ref.dtype)

    # Per step: one row tile of relu(adj @ h), stored lane-dense in f32.
    acc = jnp.dot(adj_ref[...], h_ref[...], preferred_element_type=jnp.float32)
    o_ref[...] = jnp.maximum(acc, 0.0).astype(o_ref.dtype)


def _feature_transform_kernel(x_ref, w_ref, h_ref):
    h_ref[...] = jnp.dot(
        x_ref[...], w_ref[...], preferred_element_type=jnp.float32
    ).astype(h_ref.dtype)


def _aggregate_kernel(adj_ref, h_ref, o_ref):
    acc = jnp.dot(adj_ref[...], h_ref[...], preferred_element_type=jnp.float32)
    o_ref[...] = jnp.maximum(acc, 0.0).astype(o_ref.dtype)


# ----------------------------------------------------------------------------
# wrappers
# ----------------------------------------------------------------------------
def prepare_adjacency(adj, *, row_tile=256, compute_dtype=jnp.bfloat16):
    """Pad + cast the (constant) normalized adjacency ONCE, upstream.

    The aggregation kernel is HBM-bound on adj; padding/casting inside every
    layer call would roughly triple the per-invocation HBM traffic.
    """
    assert row_tile % 128 == 0, "row_tile must be a multiple of 128"
    n = adj.shape[0]
    n_pad = _round_up(n, row_tile)
    return _pad2d(adj, n_pad, n_pad, compute_dtype)


def graph_conv_sparse(x, adj, weight, *, row_tile=256,
                      compute_dtype=jnp.bfloat16, adj_buffers=2,
                      multicore=False):
    """relu(adj @ (x @ weight)) via Pallas. Returns float32 (N, out_dim).

    `adj` may be the raw (N, N) float adjacency or (preferred) the result of
    prepare_adjacency().  Set multicore=True on 2-TensorCore chips (v7x) to
    shard the row-tile grid across cores via two "parallel" pallas_calls.
    """
    assert row_tile % 128 == 0, "row_tile must be a multiple of 128"
    N, in_dim = x.shape
    in_dim_w, out_dim = weight.shape
    assert in_dim == in_dim_w

    # Accept a pre-prepared adjacency (already padded to a row_tile multiple
    # and cast to the compute dtype); otherwise prepare it here.
    if (adj.ndim == 2 and adj.shape[0] == adj.shape[1]
            and adj.shape[0] >= N and adj.shape[0] % row_tile == 0
            and adj.dtype == jnp.dtype(compute_dtype)):
        adjp = adj
    else:
        assert adj.shape == (N, N)
        adjp = prepare_adjacency(adj, row_tile=row_tile,
                                 compute_dtype=compute_dtype)

    Np = adjp.shape[0]
    Kp = _round_up(in_dim, 128)
    Dp = _round_up(out_dim, 128)

    # Zero padding is semantically inert: padded x rows / W cols produce zero
    # h entries, padded adj columns hit zero h rows, and relu(0) == 0 on the
    # padded output rows which are sliced off below.
    xp = _pad2d(x, Np, Kp, compute_dtype)
    wp = _pad2d(weight, Kp, Dp, compute_dtype)

    grid = (Np // row_tile,)
    out_nbytes = _nbytes((Np, Dp), jnp.float32)
    cost = pl.CostEstimate(
        flops=2 * Np * Kp * Dp + 2 * Np * Np * Dp,
        bytes_accessed=int(xp.nbytes) + int(wp.nbytes) + int(adjp.nbytes) + out_nbytes,
        transcendentals=0,
    )

    def _adj_spec(use_buffered):
        if use_buffered and adj_buffers != 2:
            return pl.BlockSpec((row_tile, Np), lambda i: (i, 0),
                                pipeline_mode=pl.Buffered(adj_buffers))
        return _row_spec((row_tile, Np))

    def run_fused(use_buffered):
        resident = (
            (1 if use_buffered else 2) * (int(xp.nbytes) + int(wp.nbytes))
            + max(adj_buffers, 2) * _nbytes((row_tile, Np), compute_dtype)
            + 2 * _nbytes((row_tile, Dp), jnp.float32)
            + _nbytes((Np, Dp), compute_dtype)
        )
        return pl.pallas_call(
            _fused_gcn_kernel,
            out_shape=jax.ShapeDtypeStruct((Np, Dp), jnp.float32),
            grid_spec=pltpu.PrefetchScalarGridSpec(
                num_scalar_prefetch=0,
                grid=grid,
                in_specs=[
                    _const_spec((Np, Kp), use_buffered),   # x: resident
                    _const_spec((Kp, Dp), use_buffered),   # W: resident
                    _adj_spec(use_buffered),               # adj: streamed rows
                ],
                out_specs=_row_spec((row_tile, Dp)),
                scratch_shapes=[pltpu.VMEM((Np, Dp), compute_dtype)],
            ),
            compiler_params=_CompilerParams(
                # h is written on step 0 and reused later -> sequential grid.
                dimension_semantics=("arbitrary",),
                vmem_limit_bytes=_vmem_limit(resident),
            ),
            cost_estimate=cost,
        )(xp, wp, adjp)

    def run_split(use_buffered):
        # v7x path: both calls are row-parallel so the 2 TensorCores split the
        # grid; the extra HBM round-trip of h is negligible next to adj.
        h_resident = ((1 if use_buffered else 2) * int(wp.nbytes)
                      + 2 * _nbytes((row_tile, Kp), compute_dtype)
                      + 2 * _nbytes((row_tile, Dp), compute_dtype))
        h = pl.pallas_call(
            _feature_transform_kernel,
            out_shape=jax.ShapeDtypeStruct((Np, Dp), compute_dtype),
            grid_spec=pltpu.PrefetchScalarGridSpec(
                num_scalar_prefetch=0,
                grid=grid,
                in_specs=[_row_spec((row_tile, Kp)),
                          _const_spec((Kp, Dp), use_buffered)],
                out_specs=_row_spec((row_tile, Dp)),
            ),
            compiler_params=_CompilerParams(
                dimension_semantics=("parallel",),
                vmem_limit_bytes=_vmem_limit(h_resident),
            ),
        )(xp, wp)

        agg_resident = ((1 if use_buffered else 2) * _nbytes((Np, Dp), compute_dtype)
                        + max(adj_buffers, 2) * _nbytes((row_tile, Np), compute_dtype)
                        + 2 * _nbytes((row_tile, Dp), jnp.float32))
        return pl.pallas_call(
            _aggregate_kernel,
            out_shape=jax.ShapeDtypeStruct((Np, Dp), jnp.float32),
            grid_spec=pltpu.PrefetchScalarGridSpec(
                num_scalar_prefetch=0,
                grid=grid,
                in_specs=[_adj_spec(use_buffered),
                          _const_spec((Np, Dp), use_buffered)],  # h: resident
                out_specs=_row_spec((row_tile, Dp)),
            ),
            compiler_params=_CompilerParams(
                dimension_semantics=("parallel",),
                vmem_limit_bytes=_vmem_limit(agg_resident),
            ),
            cost_estimate=cost,
        )(adjp, h)

    run = run_split if multicore else run_fused
    if _HAS_BUFFERED:
        try:
            out = run(True)
        except Exception:
            # pipeline_mode / Buffered(1) not supported by this jax build.
            out = run(False)
    else:
        out = run(False)

    return out[:N, :out_dim]


def glorot_init(key, input_dim, output_dim):
    init_range = np.sqrt(6.0 / (input_dim + output_dim))
    return jax.random.uniform(
        key, (input_dim, output_dim), dtype=jnp.float32,
        minval=-init_range, maxval=init_range,
    )


if __name__ == "__main__":
    # Small, deterministic demo shapes (deliberately non-multiples of the tile
    # sizes to exercise the padding / row-rounding fix).
    num_nodes = 100
    input_dim = 200
    output_dim = 64

    key = jax.random.PRNGKey(0)
    k_x, k_adj, k_w = jax.random.split(key, 3)

    # node features
    x = jax.random.normal(k_x, (num_nodes, input_dim), dtype=jnp.float32)

    # symmetric-normalized dense adjacency (deterministic synthetic graph);
    # the "sparse" adj of the original module is materialized dense here.
    a = (jax.random.uniform(k_adj, (num_nodes, num_nodes)) < 0.1).astype(jnp.float32)
    a = jnp.maximum(a, a.T) + jnp.eye(num_nodes, dtype=jnp.float32)
    deg_inv_sqrt = 1.0 / jnp.sqrt(a.sum(axis=1))
    adj = a * deg_inv_sqrt[:, None] * deg_inv_sqrt[None, :]

    # Glorot-initialized weight (shapes as in the module __init__)
    weight = glorot_init(k_w, input_dim, output_dim)

    # Pad/cast the constant adjacency ONCE, upstream of the per-layer calls.
    adj_prep = prepare_adjacency(adj)

    out_fused = jax.block_until_ready(graph_conv_sparse(x, adj_prep, weight))
    out_split = jax.block_until_ready(
        graph_conv_sparse(x, adj_prep, weight, multicore=True))

    # reference check against plain f32 JAX (kernel uses bf16 MXU inputs with
    # f32 accumulation, hence the loosened tolerance)
    ref = jnp.maximum(adj @ (x @ weight), 0.0)
    np.testing.assert_allclose(np.asarray(out_fused), np.asarray(ref),
                               rtol=3e-2, atol=3e-2)
    np.testing.assert_allclose(np.asarray(out_split), np.asarray(ref),
                               rtol=3e-2, atol=3e-2)

    print("KERNEL_OK")
</pallas_src>

<mosaic_0001>
module attributes {stable_mosaic.version = 11 : i64} {
  func.func @_fused_gcn_kernel(%arg0: i32, %arg1: memref<256x256xbf16, #tpu.memory_space<vmem>>, %arg2: memref<256x128xbf16, #tpu.memory_space<vmem>>, %arg3: memref<256x256xbf16, #tpu.memory_space<vmem>>, %arg4: memref<256x128xf32, #tpu.memory_space<vmem>>, %arg5: memref<256x128xbf16, #tpu.memory_space<vmem>>) attributes {dimension_semantics = [#tpu.dimension_semantics<arbitrary>], iteration_bounds = array<i64: 1>, scalar_prefetch = 0 : i64, scratch_operands = 1 : i64, tpu.core_type = #tpu.core_type<tc>, window_params = [{pipeline_mode = #tpu.pipeline_mode<synchronous>, transform_indices = @transform_0, window_bounds = array<i64: 256, 256>}, {pipeline_mode = #tpu.pipeline_mode<synchronous>, transform_indices = @transform_1, window_bounds = array<i64: 256, 128>}, {transform_indices = @transform_2, window_bounds = array<i64: 256, 256>}, {transform_indices = @transform_3, window_bounds = array<i64: 256, 128>}]} {
    %c0_i32 = arith.constant 0 : i32
    %0 = arith.cmpi eq, %arg0, %c0_i32 : i32
    %1 = arith.extui %0 : i1 to i32
    %c0_i32_0 = arith.constant 0 : i32
    %2 = arith.cmpi ne, %1, %c0_i32_0 : i32
    scf.if %2 {
      %c0_7 = arith.constant 0 : index
      %c0_8 = arith.constant 0 : index
      %9 = vector.load %arg1[%c0_7, %c0_8] : memref<256x256xbf16, #tpu.memory_space<vmem>>, vector<256x256xbf16>
      %c0_9 = arith.constant 0 : index
      %c0_10 = arith.constant 0 : index
      %10 = vector.load %arg2[%c0_9, %c0_10] : memref<256x128xbf16, #tpu.memory_space<vmem>>, vector<256x128xbf16>
      %cst_11 = arith.constant dense<0.000000e+00> : vector<256x128xf32>
      %11 = tpu.matmul %9, %10, %cst_11 {dimension_numbers = #tpu.dot_dimension_numbers<[1], [0], [0], [1], [0, 0, 1, 1], [], []>} : vector<256x256xbf16>, vector<256x128xbf16>, vector<256x128xf32> -> vector<256x128xf32>
      %12 = arith.truncf %11 : vector<256x128xf32> to vector<256x128xbf16>
      %c0_12 = arith.constant 0 : index
      %c0_13 = arith.constant 0 : index
      %13 = vector.load %arg5[%c0_12, %c0_13] : memref<256x128xbf16, #tpu.memory_space<vmem>>, vector<256x128xbf16>
      tpu.vector_store %arg5[%c0_12, %c0_13], %12 {strides = array<i32>} : memref<256x128xbf16, #tpu.memory_space<vmem>>, vector<256x128xbf16>,
    } else {
    }
    %c0 = arith.constant 0 : index
    %c0_1 = arith.constant 0 : index
    %3 = vector.load %arg3[%c0, %c0_1] : memref<256x256xbf16, #tpu.memory_space<vmem>>, vector<256x256xbf16>
    %c0_2 = arith.constant 0 : index
    %c0_3 = arith.constant 0 : index
    %4 = vector.load %arg5[%c0_2, %c0_3] : memref<256x128xbf16, #tpu.memory_space<vmem>>, vector<256x128xbf16>
    %cst = arith.constant dense<0.000000e+00> : vector<256x128xf32>
    %5 = tpu.matmul %3, %4, %cst {dimension_numbers = #tpu.dot_dimension_numbers<[1], [0], [0], [1], [0, 0, 1, 1], [], []>} : vector<256x256xbf16>, vector<256x128xbf16>, vector<256x128xf32> -> vector<256x128xf32>
    %cst_4 = arith.constant 0.000000e+00 : f32
    %6 = vector.broadcast %cst_4 : f32 to vector<256x128xf32>
    %7 = arith.maximumf %5, %6 : vector<256x128xf32>
    %c0_5 = arith.constant 0 : index
    %c0_6 = arith.constant 0 : index
    %8 = vector.load %arg4[%c0_5, %c0_6] : memref<256x128xf32, #tpu.memory_space<vmem>>, vector<256x128xf32>
    tpu.vector_store %arg4[%c0_5, %c0_6], %7 {strides = array<i32>} : memref<256x128xf32, #tpu.memory_space<vmem>>, vector<256x128xf32>,
    return
  }
  func.func @transform_0(%arg0: i32) -> (i32, i32) {
    %c0_i32 = arith.constant 0 : i32
    %c0_i32_0 = arith.constant 0 : i32
    %c0_i32_1 = arith.constant 0 : i32
    return %c0_i32, %c0_i32_0 : i32, i32
  }
  func.func @transform_1(%arg0: i32) -> (i32, i32) {
    %c0_i32 = arith.constant 0 : i32
    %c0_i32_0 = arith.constant 0 : i32
    %c0_i32_1 = arith.constant 0 : i32
    return %c0_i32, %c0_i32_0 : i32, i32
  }
  func.func @transform_2(%arg0: i32) -> (i32, i32) {
    %c0_i32 = arith.constant 0 : i32
    %c0_i32_0 = arith.constant 0 : i32
    return %arg0, %c0_i32 : i32, i32
  }
  func.func @transform_3(%arg0: i32) -> (i32, i32) {
    %c0_i32 = arith.constant 0 : i32
    %c0_i32_0 = arith.constant 0 : i32
    return %arg0, %c0_i32 : i32, i32
  }
}

module attributes {stable_mosaic.version = 11 : i64} {
  func.func @_fused_gcn_kernel(%arg0: i32, %arg1: memref<256x256xbf16, #tpu.memory_space<vmem>>, %arg2: memref<256x128xbf16, #tpu.memory_space<vmem>>, %arg3: memref<256x256xbf16, #tpu.memory_space<vmem>>, %arg4: memref<256x128xf32, #tpu.memory_space<vmem>>, %arg5: memref<256x128xbf16, #tpu.memory_space<vmem>>) attributes {dimension_semantics = [#tpu.dimension_semantics<arbitrary>], iteration_bounds = array<i64: 1>, scalar_prefetch = 0 : i64, scratch_operands = 1 : i64, tpu.core_type = #tpu.core_type<tc>, window_params = [{pipeline_mode = #tpu.pipeline_mode<synchronous>, transform_indices = @transform_0, window_bounds = array<i64: 256, 256>}, {pipeline_mode = #tpu.pipeline_mode<synchronous>, transform_indices = @transform_1, window_bounds = array<i64: 256, 128>}, {transform_indices = @transform_2, window_bounds = array<i64: 256, 256>}, {transform_indices = @transform_3, window_bounds = array<i64: 256, 128>}]} {
    %c0_i32 = arith.constant 0 : i32
    %0 = arith.cmpi eq, %arg0, %c0_i32 : i32
    %1 = arith.extui %0 : i1 to i32
    %c0_i32_0 = arith.constant 0 : i32
    %2 = arith.cmpi ne, %1, %c0_i32_0 : i32
    scf.if %2 {
      %c0_7 = arith.constant 0 : index
      %c0_8 = arith.constant 0 : index
      %9 = vector.load %arg1[%c0_7, %c0_8] : memref<256x256xbf16, #tpu.memory_space<vmem>>, vector<256x256xbf16>
      %c0_9 = arith.constant 0 : index
      %c0_10 = arith.constant 0 : index
      %10 = vector.load %arg2[%c0_9, %c0_10] : memref<256x128xbf16, #tpu.memory_space<vmem>>, vector<256x128xbf16>
      %cst_11 = arith.constant dense<0.000000e+00> : vector<256x128xf32>
      %11 = tpu.matmul %9, %10, %cst_11 {dimension_numbers = #tpu.dot_dimension_numbers<[1], [0], [0], [1], [0, 0, 1, 1], [], []>} : vector<256x256xbf16>, vector<256x128xbf16>, vector<256x128xf32> -> vector<256x128xf32>
      %12 = arith.truncf %11 : vector<256x128xf32> to vector<256x128xbf16>
      %c0_12 = arith.constant 0 : index
      %c0_13 = arith.constant 0 : index
      %13 = vector.load %arg5[%c0_12, %c0_13] : memref<256x128xbf16, #tpu.memory_space<vmem>>, vector<256x128xbf16>
      tpu.vector_store %arg5[%c0_12, %c0_13], %12 {strides = array<i32>} : memref<256x128xbf16, #tpu.memory_space<vmem>>, vector<256x128xbf16>,
    } else {
    }
    %c0 = arith.constant 0 : index
    %c0_1 = arith.constant 0 : index
    %3 = vector.load %arg3[%c0, %c0_1] : memref<256x256xbf16, #tpu.memory_space<vmem>>, vector<256x256xbf16>
    %c0_2 = arith.constant 0 : index
    %c0_3 = arith.constant 0 : index
    %4 = vector.load %arg5[%c0_2, %c0_3] : memref<256x128xbf16, #tpu.memory_space<vmem>>, vector<256x128xbf16>
    %cst = arith.constant dense<0.000000e+00> : vector<256x128xf32>
    %5 = tpu.matmul %3, %4, %cst {dimension_numbers = #tpu.dot_dimension_numbers<[1], [0], [0], [1], [0, 0, 1, 1], [], []>} : vector<256x256xbf16>, vector<256x128xbf16>, vector<256x128xf32> -> vector<256x128xf32>
    %cst_4 = arith.constant 0.000000e+00 : f32
    %6 = vector.broadcast %cst_4 : f32 to vector<256x128xf32>
    %7 = arith.maximumf %5, %6 : vector<256x128xf32>
    %c0_5 = arith.constant 0 : index
    %c0_6 = arith.constant 0 : index
    %8 = vector.load %arg4[%c0_5, %c0_6] : memref<256x128xf32, #tpu.memory_space<vmem>>, vector<256x128xf32>
    tpu.vector_store %arg4[%c0_5, %c0_6], %7 {strides = array<i32>} : memref<256x128xf32, #tpu.memory_space<vmem>>, vector<256x128xf32>,
    return
  }
  func.func @transform_0(%arg0: i32) -> (i32, i32) {
    %c0_i32 = arith.constant 0 : i32
    %c0_i32_0 = arith.constant 0 : i32
    %c0_i32_1 = arith.constant 0 : i32
    return %c0_i32, %c0_i32_0 : i32, i32
  }
  func.func @transform_1(%arg0: i32) -> (i32, i32) {
    %c0_i32 = arith.constant 0 : i32
    %c0_i32_0 = arith.constant 0 : i32
    %c0_i32_1 = arith.constant 0 : i32
    return %c0_i32, %c0_i32_0 : i32, i32
  }
  func.func @transform_2(%arg0: i32) -> (i32, i32) {
    %c0_i32 = arith.constant 0 : i32
    %c0_i32_0 = arith.constant 0 : i32
    return %arg0, %c0_i32 : i32, i32
  }
  func.func @transform_3(%arg0: i32) -> (i32, i32) {
    %c0_i32 = arith.constant 0 : i32
    %c0_i32_0 = arith.constant 0 : i32
    return %arg0, %c0_i32 : i32, i32
  }
}

</mosaic_0001>

<bundles_post_ra>
// kernel: tpu_custom_call.1
= control target key start
LH: loop header
LB: loop body
LE: loop exit
PB: predicated region body
PF: predicated region fallthrough
CT: control target
= control target key end

     0   :  { %8 = vsyncpa [#allocation4], 0  ;;  %s1691_s0 = inlined_call_operand.hbm [shape: bf16[256,256], index: 0, kind: input, shape index: {}]   ;;  %s1692_s1 = inlined_call_operand.hbm [shape: bf16[256,128], index: 1, kind: input, shape index: {}]   ;;  %s1693_s2 = inlined_call_operand.hbm [shape: bf16[256,256], index: 2, kind: input, shape index: {}]   ;;  %s1694_s3 = inlined_call_operand.hbm [shape: f32[256,128], index: 3, kind: output, shape index: {}]  }
   0x1   :  { %9 = vsyncpa [#allocation7], 0 }
   0x2   :  { %10 = vsyncpa [#allocation5], 0  ;;  %s1543_s12 = smov [#allocation6]   ;;  %s1449_s16 = scalar_lea.hbm %s1692_s1, 2048 }
   0x3   :  { %s28_s13 = sshll.u32 %s1543_s12, 4  ;;  %p1450_p0 = scmp.ne.s32.totalorder %s1692_s1, %s1449_s16  ;;  %s29_s13 = int_to_ptr.vmem [resolvable:$true] %s28_s13 }
   0x4   :  { %p1453_p1 = scmp.lt.u32.totalorder %s1449_s16, %s1692_s1 }
   0x6   :  { %p1455_p2 = pnand %p1453_p1, %p1450_p0 }
   0x8   :  { %1458 = shalt.err (!%p1455_p2)
}
   0x9   :  { %s1459_s21 = scalar_lea.vmem %s29_s13, 2048  ;;  %p1464_p4 = scmp.lt.s32.totalorder %s29_s13, %s29_s13 }
   0xa   :  { %p1460_p3 = scmp.ne.s32.totalorder %s29_s13, %s1459_s21  ;;  %p1465_p5 = scmp.lt.s32.totalorder %s1459_s21, %s1459_s21 }
   0xc   :  { %p1466_p6 = por %p1465_p5, %p1464_p4 }
   0xe   :  { %p1467_p7 = pnand %p1466_p6, %p1460_p3 }
  0x10   :  { %1470 = shalt.err (!%p1467_p7)
}
  0x11   :  { %s1544_s22 = smov 64   ;;  %s1545_s23 = smov 4  }
  0x12   :  { %34 = dma.hbm_to_vmem [thread:$0]  %s1692_s1, 2048, %s29_s13, [#allocation7], %s1544_s22, %s1544_s22, %s1545_s23  }
  0x13   :  { %s1546_s26 = smov [#allocation3]   ;;  %s1471_s30 = scalar_lea.hbm %s1691_s0, 4096 }
  0x14   :  { %s16_s27 = sshll.u32 %s1546_s26, 4  ;;  %p1472_p8 = scmp.ne.s32.totalorder %s1691_s0, %s1471_s30  ;;  %s17_s27 = int_to_ptr.vmem [resolvable:$true] %s16_s27 }
  0x15   :  { %p1475_p9 = scmp.lt.u32.totalorder %s1471_s30, %s1691_s0 }
  0x17   :  { %p1477_p10 = pnand %p1475_p9, %p1472_p8 }
  0x19   :  { %1480 = shalt.err (!%p1477_p10)
}
  0x1a   :  { %s1481_s8 = scalar_lea.vmem %s17_s27, 4096  ;;  %p1486_p12 = scmp.lt.s32.totalorder %s17_s27, %s17_s27 }
  0x1b   :  { %p1482_p11 = scmp.ne.s32.totalorder %s17_s27, %s1481_s8  ;;  %p1487_p13 = scmp.lt.s32.totalorder %s1481_s8, %s1481_s8 }
  0x1d   :  { %p1488_p0 = por %p1487_p13, %p1486_p12 }
  0x1f   :  { %p1489_p1 = pnand %p1488_p0, %p1482_p11 }
  0x21   :  { %1492 = shalt.err (!%p1489_p1)
}
  0x22   :  { %s1547_s1 = smov 128   ;;  %s1548_s9 = smov 8  }
  0x23   :  { %22 = dma.hbm_to_vmem [thread:$0]  %s1691_s0, 4096, %s17_s27, [#allocation4], %s1547_s1, %s1547_s1, %s1548_s9  }
  0x24   :  { %s1549_s12 = smov [#allocation8]   ;;  %s1493_s16 = scalar_lea.hbm %s1693_s2, 4096 }
  0x25   :  { %s40_s13 = sshll.u32 %s1549_s12, 4  ;;  %p1494_p2 = scmp.ne.s32.totalorder %s1693_s2, %s1493_s16  ;;  %s41_s13 = int_to_ptr.vmem [resolvable:$true] %s40_s13 }
  0x26   :  { %p1497_p3 = scmp.lt.u32.totalorder %s1493_s16, %s1693_s2 }
  0x28   :  { %p1499_p4 = pnand %p1497_p3, %p1494_p2 }
  0x2a   :  { %1502 = shalt.err (!%p1499_p4)
}
  0x2b   :  { %s1503_s21 = scalar_lea.vmem %s41_s13, 4096  ;;  %p1508_p6 = scmp.lt.s32.totalorder %s41_s13, %s41_s13 }
  0x2c   :  { %p1504_p5 = scmp.ne.s32.totalorder %s41_s13, %s1503_s21  ;;  %p1509_p7 = scmp.lt.s32.totalorder %s1503_s21, %s1503_s21 }
  0x2e   :  { %p1510_p8 = por %p1509_p7, %p1508_p6 }
  0x30   :  { %p1511_p9 = pnand %p1510_p8, %p1504_p5 }
  0x32   :  { %1514 = shalt.err (!%p1511_p9)
}
  0x33   :  { %46 = dma.hbm_to_vmem [thread:$0]  %s1693_s2, 4096, %s41_s13, [#allocation7], %s1547_s1, %s1547_s1, %s1548_s9  }
  0x34   :  { %1537 = dma.done.wait [#allocation4], 4096  }
  0x35   :  { %1538 = vsyncadd [#allocation4], 4294963200 }
  0x36   :  { %1539 = dma.done.wait [#allocation7], 6144  }
  0x37   :  { %1540 = vsyncadd [#allocation7], 4294961152  ;;  %v1337_v0 = vld [vmem:[#allocation6 + $0x40] sm:$0xff]   ;;  %v1339_v2 = vld [vmem:[#allocation6 + $0x48] sm:$0xff]   ;;  %s1550_s2 = smov [#allocation9]  }
  0x38   :  { %v1338_v1 = vld [vmem:[#allocation6] sm:$0xff]   ;;  %1105 = vmatprep.subr.bf16.mxu0 %v1337_v0  ;;  %v1340_v3 = vld [vmem:[#allocation6 + $0x8] sm:$0xff]   ;;  %v1341_v4 = vld [vmem:[#allocation6 + $0x50] sm:$0xff]   ;;  %s1012_s23 = sshll.u32 %s1550_s2, 4  ;;  %s1013_s23 = int_to_ptr.vmem [resolvable:$true] %s1012_s23 }
  0x39   :  { %1106 = vmatpush3.bf16.msra.mxu0 %v1338_v1  ;;  %v1342_v5 = vld [vmem:[#allocation6 + $0x10] sm:$0xff]   ;;  %v1343_v6 = vld [vmem:[#allocation6 + $0x58] sm:$0xff]   ;;  %v1345_v8 = vld [vmem:[#allocation6 + $0x60] sm:$0xff]   ;;  %s1515_s24 = scalar_lea.vmem %s1013_s23, 4096  ;;  %p1520_p11 = scmp.lt.s32.totalorder %s1013_s23, %s1013_s23 }
  0x3a   :  { %1107 = vmatprep.subr.bf16.mxu0 %v1339_v2  ;;  %v1344_v7 = vld [vmem:[#allocation6 + $0x18] sm:$0xff]   ;;  %v1346_v9 = vld [vmem:[#allocation6 + $0x20] sm:$0xff]   ;;  %v1347_v10 = vld [vmem:[#allocation6 + $0x68] sm:$0xff]   ;;  %p1516_p10 = scmp.ne.s32.totalorder %s1013_s23, %s1515_s24  ;;  %p1521_p12 = scmp.lt.s32.totalorder %s1515_s24, %s1515_s24 }
  0x3b   :  { %v1355_v11 = vld [vmem:[#allocation3 + $0x4] ss:$8 sps:$4 sm:$0xff]   ;;  %v1349_v13 = vld [vmem:[#allocation6 + $0x70] sm:$0xff]   ;;  %v1351_v15 = vld [vmem:[#allocation6 + $0x78] sm:$0xff]  }
  0x3c   :  { %v1348_v12 = vld [vmem:[#allocation6 + $0x28] sm:$0xff]   ;;  %413 = vmatprep.mubr.bf16.mxu0 %v1355_v11  ;;  %v1350_v14 = vld [vmem:[#allocation6 + $0x30] sm:$0xff]   ;;  %v1352_v16 = vld [vmem:[#allocation6 + $0x38] sm:$0xff]   ;;  %p1522_p13 = por %p1521_p12, %p1520_p11 }
  0x3d   :  { %1108 = vmatpush3.bf16.msra.mxu0 %v1340_v3  ;;  %v1353_v17 = vld [vmem:[#allocation3] ss:$8 sps:$4 sm:$0xff]   ;;  %v1356_v18 = vld [vmem:[#allocation3 + $0x14] ss:$8 sps:$4 sm:$0xff]   ;;  %v1358_v19 = vld [vmem:[#allocation3 + $0x10] ss:$8 sps:$4 sm:$0xff]  }
  0x3e   :  { %1109 = vmatprep.subr.bf16.mxu0 %v1341_v4  ;;  %v1359_v20 = vld [vmem:[#allocation3 + $0x24] ss:$8 sps:$4 sm:$0xff]   ;;  %v1361_v21 = vld [vmem:[#allocation3 + $0x20] ss:$8 sps:$4 sm:$0xff]   ;;  %v1362_v22 = vld [vmem:[#allocation3 + $0x34] ss:$8 sps:$4 sm:$0xff]   ;;  %p1523_p0 = pnand %p1522_p13, %p1516_p10 }
  0x3f   :  { %v1364_v23 = vld [vmem:[#allocation3 + $0x30] ss:$8 sps:$4 sm:$0xff]   ;;  %v1365_v24 = vld [vmem:[#allocation3 + $0x44] ss:$8 sps:$4 sm:$0xff]   ;;  %v1367_v25 = vld [vmem:[#allocation3 + $0x40] ss:$8 sps:$4 sm:$0xff]  }
  0x40   :  { %v1368_v26 = vld [vmem:[#allocation3 + $0x54] ss:$8 sps:$4 sm:$0xff]   ;;  %v1370_v27 = vld [vmem:[#allocation3 + $0x50] ss:$8 sps:$4 sm:$0xff]   ;;  %v1371_v28 = vld [vmem:[#allocation3 + $0x64] ss:$8 sps:$4 sm:$0xff]  }
  0x41   :  { %1110 = vmatpush3.bf16.msra.mxu0 %v1342_v5  ;;  %v1373_v29 = vld [vmem:[#allocation3 + $0x60] ss:$8 sps:$4 sm:$0xff]   ;;  %v1374_v30 = vld [vmem:[#allocation3 + $0x74] ss:$8 sps:$4 sm:$0xff]   ;;  %v1376_v31 = vld [vmem:[#allocation3 + $0x70] ss:$8 sps:$4 sm:$0xff]  }
  0x42   :  { %1111 = vmatprep.subr.bf16.mxu0 %v1343_v6  ;;  %v1377_v32 = vld [vmem:[#allocation3 + $0x84] ss:$8 sps:$4 sm:$0xff]   ;;  %v1379_v33 = vld [vmem:[#allocation3 + $0x80] ss:$8 sps:$4 sm:$0xff]   ;;  %v1380_v34 = vld [vmem:[#allocation3 + $0x94] ss:$8 sps:$4 sm:$0xff]  }
  0x43   :  { %v1382_v35 = vld [vmem:[#allocation3 + $0x90] ss:$8 sps:$4 sm:$0xff]   ;;  %v1383_v36 = vld [vmem:[#allocation3 + $0xa4] ss:$8 sps:$4 sm:$0xff]   ;;  %v1385_v37 = vld [vmem:[#allocation3 + $0xa0] ss:$8 sps:$4 sm:$0xff]  }
  0x44   :  { %v1386_v38 = vld [vmem:[#allocation3 + $0xb4] ss:$8 sps:$4 sm:$0xff]   ;;  %v1388_v39 = vld [vmem:[#allocation3 + $0xb0] ss:$8 sps:$4 sm:$0xff]   ;;  %v1389_v40 = vld [vmem:[#allocation3 + $0xc4] ss:$8 sps:$4 sm:$0xff]  }
  0x45   :  { %1112 = vmatpush3.bf16.msra.mxu0 %v1344_v7  ;;  %v1391_v41 = vld [vmem:[#allocation3 + $0xc0] ss:$8 sps:$4 sm:$0xff]   ;;  %v1392_v42 = vld [vmem:[#allocation3 + $0xd4] ss:$8 sps:$4 sm:$0xff]   ;;  %v1394_v43 = vld [vmem:[#allocation3 + $0xd0] ss:$8 sps:$4 sm:$0xff]  }
  0x46   :  { %1113 = vmatprep.subr.bf16.mxu0 %v1345_v8  ;;  %v1395_v44 = vld [vmem:[#allocation3 + $0xe4] ss:$8 sps:$4 sm:$0xff]   ;;  %v1397_v45 = vld [vmem:[#allocation3 + $0xe0] ss:$8 sps:$4 sm:$0xff]   ;;  %v1398_v46 = vld [vmem:[#allocation3 + $0xf4] ss:$8 sps:$4 sm:$0xff]  }
  0x47   :  { %v1400_v47 = vld [vmem:[#allocation3 + $0xf0] ss:$8 sps:$4 sm:$0xff]   ;;  %v1403_v50 = vld [vmem:[#allocation8 + $0x4] ss:$8 sps:$4 sm:$0xff]  }
  0x48   :  { %814 = vmatprep.mubr.bf16.mxu1 %v1403_v50 }
  0x49   :  { %1114 = vmatpush3.bf16.msra.mxu0 %v1346_v9 }
  0x4a   :  { %1115 = vmatprep.subr.bf16.mxu0 %v1347_v10 }
  0x4d   :  { %1116 = vmatpush3.bf16.msra.mxu0 %v1348_v12 }
  0x4e   :  { %1117 = vmatprep.subr.bf16.mxu0 %v1349_v13 }
  0x51   :  { %1118 = vmatpush3.bf16.msra.mxu0 %v1350_v14 }
  0x52   :  { %1119 = vmatprep.subr.bf16.mxu0 %v1351_v15 }
  0x55   :  { %1120 = vmatpush3.bf16.msra.mxu0 %v1352_v16 }
  0x58   :  { %414 = vmatmul.mubr.bf16.vlgmr.msra.gmra.mrb[0].mxu0 %v1353_v17 }
  0x59   :  { %421 = vmatprep.mubr.bf16.mxu0 %v1356_v18 }
  0x60   :  { %422 = vmatmul.mubr.bf16.gmra.mrb[4].mxu0 %v1358_v19 }
  0x61   :  { %429 = vmatprep.mubr.bf16.mxu0 %v1359_v20 }
  0x68   :  { %430 = vmatmul.mubr.bf16.gmra.mrb[8].mxu0 %v1361_v21 }
  0x69   :  { %437 = vmatprep.mubr.bf16.mxu0 %v1362_v22 }
  0x70   :  { %438 = vmatmul.mubr.bf16.gmra.mrb[12].mxu0 %v1364_v23 }
  0x71   :  { %445 = vmatprep.mubr.bf16.mxu0 %v1365_v24 }
  0x78   :  { %446 = vmatmul.mubr.bf16.gmra.mrb[16].mxu0 %v1367_v25 }
  0x79   :  { %453 = vmatprep.mubr.bf16.mxu0 %v1368_v26 }
  0x80   :  { %454 = vmatmul.mubr.bf16.gmra.mrb[20].mxu0 %v1370_v27 }
  0x81   :  { %461 = vmatprep.mubr.bf16.mxu0 %v1371_v28 }
  0x88   :  { %462 = vmatmul.mubr.bf16.gmra.mrb[24].mxu0 %v1373_v29 }
  0x89   :  { %469 = vmatprep.mubr.bf16.mxu0 %v1374_v30 }
  0x90   :  { %470 = vmatmul.mubr.bf16.gmra.mrb[28].mxu0 %v1376_v31 }
  0x91   :  { %477 = vmatprep.mubr.bf16.mxu0 %v1377_v32 }
  0x98   :  { %478 = vmatmul.mubr.bf16.gmra.mrb[32].mxu0 %v1379_v33 }
  0x99   :  { %485 = vmatprep.mubr.bf16.mxu0 %v1380_v34 }
  0xa0   :  { %486 = vmatmul.mubr.bf16.gmra.mrb[36].mxu0 %v1382_v35 }
  0xa1   :  { %493 = vmatprep.mubr.bf16.mxu0 %v1383_v36 }
  0xa8   :  { %494 = vmatmul.mubr.bf16.gmra.mrb[40].mxu0 %v1385_v37 }
  0xa9   :  { %501 = vmatprep.mubr.bf16.mxu0 %v1386_v38 }
  0xb0   :  { %502 = vmatmul.mubr.bf16.gmra.mrb[44].mxu0 %v1388_v39 }
  0xb1   :  { %509 = vmatprep.mubr.bf16.mxu0 %v1389_v40 }
  0xb8   :  { %510 = vmatmul.mubr.bf16.gmra.mrb[48].mxu0 %v1391_v41 }
  0xb9   :  { %517 = vmatprep.mubr.bf16.mxu0 %v1392_v42 }
  0xc0   :  { %518 = vmatmul.mubr.bf16.gmra.mrb[52].mxu0 %v1394_v43 }
  0xc1   :  { %525 = vmatprep.mubr.bf16.mxu0 %v1395_v44 }
  0xc8   :  { %526 = vmatmul.mubr.bf16.gmra.mrb[56].mxu0 %v1397_v45 }
  0xc9   :  { %533 = vmatprep.mubr.bf16.mxu0 %v1398_v46 }
  0xd0   :  { %534 = vmatmul.mubr.bf16.gmra.mrb[60].mxu0 %v1400_v47 }
 0x12b   :  { %v1121_v48 = vpop.f32.mrb[0].mxu0 }
 0x12c   :  { %v1122_v49 = vpop.f32.mrb[1].mxu0 }
 0x12d   :  { %v1613_v51 = vadd.f32 %v1122_v49, %v1121_v48  ;;  %v1124_v52 = vpop.f32.mrb[2].mxu0 }
 0x12e   :  { %v1125_v53 = vpop.f32.mrb[3].mxu0 }
 0x12f   :  { %v1126_v54 = vadd.f32 %v1125_v53, %v1124_v52 }
 0x131   :  { %v542_v55 = vpack.c.bf16 %v1126_v54, %v1613_v51 }
 0x133   :  { %v1127_v56 = vpop.f32.mrb[4].mxu0 }
 0x134   :  { %v1128_v57 = vpop.f32.mrb[5].mxu0 }
 0x135   :  { %v1616_v58 = vadd.f32 %v1128_v57, %v1127_v56  ;;  %v1130_v59 = vpop.f32.mrb[6].mxu0 }
 0x136   :  { %v1131_v60 = vpop.f32.mrb[7].mxu0 }
 0x137   :  { %v1618_v61 = vadd.f32 %v1131_v60, %v1130_v59 }
 0x139   :  { %v543_v62 = vpack.c.bf16 %v1618_v61, %v1616_v58 }
 0x13b   :  { %v1133_v63 = vpop.f32.mrb[8].mxu0 }
 0x13c   :  { %v1134_v0 = vpop.f32.mrb[9].mxu0 }
 0x13d   :  { %v1622_v1 = vadd.f32 %v1134_v0, %v1133_v63  ;;  %v1136_v2 = vpop.f32.mrb[10].mxu0 }
 0x13e   :  { %v1137_v3 = vpop.f32.mrb[11].mxu0 }
 0x13f   :  { %v1624_v4 = vadd.f32 %v1137_v3, %v1136_v2 }
 0x141   :  { %v544_v5 = vpack.c.bf16 %v1624_v4, %v1622_v1 }
 0x143   :  { %v1139_v6 = vpop.f32.mrb[12].mxu0 }
 0x144   :  { %v1140_v7 = vpop.f32.mrb[13].mxu0 }
 0x145   :  { %v1628_v8 = vadd.f32 %v1140_v7, %v1139_v6  ;;  %v1142_v9 = vpop.f32.mrb[14].mxu0 }
 0x146   :  { %v1143_v10 = vpop.f32.mrb[15].mxu0 }
 0x147   :  { %v1630_v11 = vadd.f32 %v1143_v10, %v1142_v9 }
 0x149   :  { %v545_v12 = vpack.c.bf16 %v1630_v11, %v1628_v8 }
 0x14b   :  { %v1145_v13 = vpop.f32.mrb[16].mxu0 }
 0x14c   :  { %v1146_v14 = vpop.f32.mrb[17].mxu0 }
 0x14d   :  { %v1634_v15 = vadd.f32 %v1146_v14, %v1145_v13  ;;  %v1148_v16 = vpop.f32.mrb[18].mxu0 }
 0x14e   :  { %v1149_v17 = vpop.f32.mrb[19].mxu0 }
 0x14f   :  { %v1636_v18 = vadd.f32 %v1149_v17, %v1148_v16 }
 0x151   :  { %v546_v19 = vpack.c.bf16 %v1636_v18, %v1634_v15 }
 0x153   :  { %v1151_v20 = vpop.f32.mrb[20].mxu0 }
 0x154   :  { %v1152_v21 = vpop.f32.mrb[21].mxu0 }
 0x155   :  { %v1640_v22 = vadd.f32 %v1152_v21, %v1151_v20  ;;  %v1154_v23 = vpop.f32.mrb[22].mxu0 }
 0x156   :  { %v1155_v24 = vpop.f32.mrb[23].mxu0 }
 0x157   :  { %v1642_v25 = vadd.f32 %v1155_v24, %v1154_v23 }
 0x159   :  { %v547_v26 = vpack.c.bf16 %v1642_v25, %v1640_v22  ;;  %v1401_v22 = vld [vmem:[#allocation8] ss:$8 sps:$4 sm:$0xff]   ;;  %v1404_v25 = vld [vmem:[#allocation8 + $0x14] ss:$8 sps:$4 sm:$0xff]  }
 0x15b   :  { %v1157_v27 = vpop.f32.mrb[24].mxu0 }
 0x15c   :  { %v1158_v28 = vpop.f32.mrb[25].mxu0 }
 0x15d   :  { %v1646_v29 = vadd.f32 %v1158_v28, %v1157_v27  ;;  %v1160_v30 = vpop.f32.mrb[26].mxu0 }
 0x15e   :  { %v1161_v31 = vpop.f32.mrb[27].mxu0 }
 0x15f   :  { %v1648_v32 = vadd.f32 %v1161_v31, %v1160_v30 }
 0x161   :  { %v548_v33 = vpack.c.bf16 %v1648_v32, %v1646_v29  ;;  %v1409_v29 = vld [vmem:[#allocation8 + $0x20] ss:$8 sps:$4 sm:$0xff]   ;;  %v1410_v32 = vld [vmem:[#allocation8 + $0x34] ss:$8 sps:$4 sm:$0xff]  }
 0x163   :  { %v1163_v34 = vpop.f32.mrb[28].mxu0 }
 0x164   :  { %v1164_v35 = vpop.f32.mrb[29].mxu0 }
 0x165   :  { %v1652_v36 = vadd.f32 %v1164_v35, %v1163_v34  ;;  %v1166_v37 = vpop.f32.mrb[30].mxu0 }
 0x166   :  { %v1167_v38 = vpop.f32.mrb[31].mxu0 }
 0x167   :  { %v1654_v39 = vadd.f32 %v1167_v38, %v1166_v37 }
 0x169   :  { %v549_v40 = vpack.c.bf16 %v1654_v39, %v1652_v36  ;;  %v1418_v36 = vld [vmem:[#allocation8 + $0x50] ss:$8 sps:$4 sm:$0xff]   ;;  %v1419_v39 = vld [vmem:[#allocation8 + $0x64] ss:$8 sps:$4 sm:$0xff]  }
 0x16b   :  { %v1169_v41 = vpop.f32.mrb[32].mxu0 }
 0x16c   :  { %v1170_v42 = vpop.f32.mrb[33].mxu0 }
 0x16d   :  { %v1171_v43 = vadd.f32 %v1170_v42, %v1169_v41  ;;  %v1172_v44 = vpop.f32.mrb[34].mxu0  ;;  %v1407_v42 = vld [vmem:[#allocation8 + $0x24] ss:$8 sps:$4 sm:$0xff]  }
 0x16e   :  { %v1173_v45 = vpop.f32.mrb[35].mxu0 }
 0x16f   :  { %v1174_v46 = vadd.f32 %v1173_v45, %v1172_v44  ;;  %v1415_v44 = vld [vmem:[#allocation8 + $0x40] ss:$8 sps:$4 sm:$0xff]   ;;  %v1416_v45 = vld [vmem:[#allocation8 + $0x54] ss:$8 sps:$4 sm:$0xff]  }
 0x171   :  { %v550_v47 = vpack.c.bf16 %v1174_v46, %v1171_v43  ;;  %v1413_v43 = vld [vmem:[#allocation8 + $0x44] ss:$8 sps:$4 sm:$0xff]   ;;  %v1422_v46 = vld [vmem:[#allocation8 + $0x74] ss:$8 sps:$4 sm:$0xff]  }
 0x173   :  { %v1175_v48 = vpop.f32.mrb[36].mxu0  ;;  %1217 = vmatprep.subr.bf16.mxu1 %v550_v47  ;;  %v1424_v47 = vld [vmem:[#allocation8 + $0x70] ss:$8 sps:$4 sm:$0xff]  }
 0x174   :  { %v1176_v49 = vpop.f32.mrb[37].mxu0  ;;  %1218 = vmatpush3.bf16.msra.mxu1 %v542_v55 }
 0x175   :  { %v1177_v50 = vadd.f32 %v1176_v49, %v1175_v48  ;;  %v1178_v51 = vpop.f32.mrb[38].mxu0  ;;  %v1425_v48 = vld [vmem:[#allocation8 + $0x84] ss:$8 sps:$4 sm:$0xff]   ;;  %v1427_v49 = vld [vmem:[#allocation8 + $0x80] ss:$8 sps:$4 sm:$0xff]  }
 0x176   :  { %v1179_v52 = vpop.f32.mrb[39].mxu0 }
 0x177   :  { %v1180_v53 = vadd.f32 %v1179_v52, %v1178_v51  ;;  %v1430_v51 = vld [vmem:[#allocation8 + $0x90] ss:$8 sps:$4 sm:$0xff]   ;;  %v1431_v52 = vld [vmem:[#allocation8 + $0xa4] ss:$8 sps:$4 sm:$0xff]  }
 0x179   :  { %v551_v54 = vpack.c.bf16 %v1180_v53, %v1177_v50  ;;  %v1428_v50 = vld [vmem:[#allocation8 + $0x94] ss:$8 sps:$4 sm:$0xff]   ;;  %v1433_v53 = vld [vmem:[#allocation8 + $0xa0] ss:$8 sps:$4 sm:$0xff]  }
 0x17b   :  { %v1181_v56 = vpop.f32.mrb[40].mxu0  ;;  %1219 = vmatprep.subr.bf16.mxu1 %v551_v54  ;;  %v1434_v54 = vld [vmem:[#allocation8 + $0xb4] ss:$8 sps:$4 sm:$0xff]  }
 0x17c   :  { %v1182_v57 = vpop.f32.mrb[41].mxu0  ;;  %1220 = vmatpush3.bf16.msra.mxu1 %v543_v62 }
 0x17d   :  { %v1183_v58 = vadd.f32 %v1182_v57, %v1181_v56  ;;  %v1184_v59 = vpop.f32.mrb[42].mxu0  ;;  %v1436_v56 = vld [vmem:[#allocation8 + $0xb0] ss:$8 sps:$4 sm:$0xff]   ;;  %v1437_v57 = vld [vmem:[#allocation8 + $0xc4] ss:$8 sps:$4 sm:$0xff]  }
 0x17e   :  { %v1185_v60 = vpop.f32.mrb[43].mxu0 }
 0x17f   :  { %v1186_v61 = vadd.f32 %v1185_v60, %v1184_v59  ;;  %v1440_v59 = vld [vmem:[#allocation8 + $0xd4] ss:$8 sps:$4 sm:$0xff]   ;;  %v1442_v60 = vld [vmem:[#allocation8 + $0xd0] ss:$8 sps:$4 sm:$0xff]  }
 0x181   :  { %v552_v63 = vpack.c.bf16 %v1186_v61, %v1183_v58  ;;  %v1439_v58 = vld [vmem:[#allocation8 + $0xc0] ss:$8 sps:$4 sm:$0xff]   ;;  %v1443_v61 = vld [vmem:[#allocation8 + $0xe4] ss:$8 sps:$4 sm:$0xff]  }
 0x183   :  { %v1187_v0 = vpop.f32.mrb[44].mxu0  ;;  %1221 = vmatprep.subr.bf16.mxu1 %v552_v63  ;;  %v1445_v63 = vld [vmem:[#allocation8 + $0xe0] ss:$8 sps:$4 sm:$0xff]  }
 0x184   :  { %v1188_v2 = vpop.f32.mrb[45].mxu0  ;;  %1222 = vmatpush3.bf16.msra.mxu1 %v544_v5 }
 0x185   :  { %v1189_v55 = vadd.f32 %v1188_v2, %v1187_v0  ;;  %v1190_v3 = vpop.f32.mrb[46].mxu0  ;;  %v1446_v0 = vld [vmem:[#allocation8 + $0xf4] ss:$8 sps:$4 sm:$0xff]   ;;  %v1448_v2 = vld [vmem:[#allocation8 + $0xf0] ss:$8 sps:$4 sm:$0xff]  }
 0x186   :  { %v1191_v6 = vpop.f32.mrb[47].mxu0 }
 0x187   :  { %v1192_v7 = vadd.f32 %v1191_v6, %v1190_v3 }
 0x189   :  { %v553_v9 = vpack.c.bf16 %v1192_v7, %v1189_v55 }
 0x18b   :  { %v1193_v10 = vpop.f32.mrb[48].mxu0  ;;  %1223 = vmatprep.subr.bf16.mxu1 %v553_v9 }
 0x18c   :  { %v1194_v62 = vpop.f32.mrb[49].mxu0  ;;  %1224 = vmatpush3.bf16.msra.mxu1 %v545_v12 }
 0x18d   :  { %v1195_v13 = vadd.f32 %v1194_v62, %v1193_v10  ;;  %v1196_v14 = vpop.f32.mrb[50].mxu0 }
 0x18e   :  { %v1197_v16 = vpop.f32.mrb[51].mxu0 }
 0x18f   :  { %v1198_v17 = vadd.f32 %v1197_v16, %v1196_v14 }
 0x191   :  { %v554_v20 = vpack.c.bf16 %v1198_v17, %v1195_v13 }
 0x193   :  { %v1199_v21 = vpop.f32.mrb[52].mxu0  ;;  %1225 = vmatprep.subr.bf16.mxu1 %v554_v20 }
 0x194   :  { %v1200_v1 = vpop.f32.mrb[53].mxu0  ;;  %1226 = vmatpush3.bf16.msra.mxu1 %v546_v19 }
 0x195   :  { %v1201_v4 = vadd.f32 %v1200_v1, %v1199_v21  ;;  %v1202_v5 = vpop.f32.mrb[54].mxu0 }
 0x196   :  { %v1203_v23 = vpop.f32.mrb[55].mxu0 }
 0x197   :  { %v1204_v24 = vadd.f32 %v1203_v23, %v1202_v5 }
 0x199   :  { %v555_v27 = vpack.c.bf16 %v1204_v24, %v1201_v4 }
 0x19b   :  { %v1205_v28 = vpop.f32.mrb[56].mxu0  ;;  %1227 = vmatprep.subr.bf16.mxu1 %v555_v27 }
 0x19c   :  { %v1206_v8 = vpop.f32.mrb[57].mxu0  ;;  %1228 = vmatpush3.bf16.msra.mxu1 %v547_v26  ;;  %v1406_v26 = vld [vmem:[#allocation8 + $0x10] ss:$8 sps:$4 sm:$0xff]  }
 0x19d   :  { %v1207_v11 = vadd.f32 %v1206_v8, %v1205_v28  ;;  %v1208_v12 = vpop.f32.mrb[58].mxu0 }
 0x19e   :  { %v1209_v30 = vpop.f32.mrb[59].mxu0 }
 0x19f   :  { %v1210_v31 = vadd.f32 %v1209_v30, %v1208_v12 }
 0x1a1   :  { %v556_v34 = vpack.c.bf16 %v1210_v31, %v1207_v11 }
 0x1a3   :  { %v1211_v35 = vpop.f32.mrb[60].mxu0  ;;  %1229 = vmatprep.subr.bf16.mxu1 %v556_v34 }
 0x1a4   :  { %v1212_v15 = vpop.f32.mrb[61].mxu0  ;;  %1230 = vmatpush3.bf16.msra.mxu1 %v548_v33  ;;  %v1412_v33 = vld [vmem:[#allocation8 + $0x30] ss:$8 sps:$4 sm:$0xff]  }
 0x1a5   :  { %v1213_v18 = vadd.f32 %v1212_v15, %v1211_v35  ;;  %v1214_v19 = vpop.f32.mrb[62].mxu0 }
 0x1a6   :  { %v1215_v37 = vpop.f32.mrb[63].mxu0 }
 0x1a7   :  { %v1216_v38 = vadd.f32 %v1215_v37, %v1214_v19 }
 0x1a9   :  { %v557_v41 = vpack.c.bf16 %v1216_v38, %v1213_v18 }
 0x1ab   :  { %1231 = vmatprep.subr.bf16.mxu1 %v557_v41 }
 0x1ac   :  { %1232 = vmatpush3.bf16.msra.mxu1 %v549_v40  ;;  %v1421_v40 = vld [vmem:[#allocation8 + $0x60] ss:$8 sps:$4 sm:$0xff]  }
 0x1af   :  { %815 = vmatmul.mubr.bf16.vlgmr.msra.gmra.mrb[0].mxu1 %v1401_v22 }
 0x1b0   :  { %822 = vmatprep.mubr.bf16.mxu1 %v1404_v25 }
 0x1b7   :  { %823 = vmatmul.mubr.bf16.gmra.mrb[4].mxu1 %v1406_v26 }
 0x1b8   :  { %830 = vmatprep.mubr.bf16.mxu1 %v1407_v42 }
 0x1bf   :  { %831 = vmatmul.mubr.bf16.gmra.mrb[8].mxu1 %v1409_v29 }
 0x1c0   :  { %838 = vmatprep.mubr.bf16.mxu1 %v1410_v32 }
 0x1c7   :  { %839 = vmatmul.mubr.bf16.gmra.mrb[12].mxu1 %v1412_v33 }
 0x1c8   :  { %846 = vmatprep.mubr.bf16.mxu1 %v1413_v43 }
 0x1cf   :  { %847 = vmatmul.mubr.bf16.gmra.mrb[16].mxu1 %v1415_v44 }
 0x1d0   :  { %854 = vmatprep.mubr.bf16.mxu1 %v1416_v45 }
 0x1d7   :  { %855 = vmatmul.mubr.bf16.gmra.mrb[20].mxu1 %v1418_v36 }
 0x1d8   :  { %862 = vmatprep.mubr.bf16.mxu1 %v1419_v39 }
 0x1df   :  { %863 = vmatmul.mubr.bf16.gmra.mrb[24].mxu1 %v1421_v40 }
 0x1e0   :  { %870 = vmatprep.mubr.bf16.mxu1 %v1422_v46 }
 0x1e7   :  { %871 = vmatmul.mubr.bf16.gmra.mrb[28].mxu1 %v1424_v47 }
 0x1e8   :  { %878 = vmatprep.mubr.bf16.mxu1 %v1425_v48 }
 0x1ef   :  { %879 = vmatmul.mubr.bf16.gmra.mrb[32].mxu1 %v1427_v49 }
 0x1f0   :  { %886 = vmatprep.mubr.bf16.mxu1 %v1428_v50 }
 0x1f7   :  { %887 = vmatmul.mubr.bf16.gmra.mrb[36].mxu1 %v1430_v51 }
 0x1f8   :  { %894 = vmatprep.mubr.bf16.mxu1 %v1431_v52 }
 0x1ff   :  { %895 = vmatmul.mubr.bf16.gmra.mrb[40].mxu1 %v1433_v53 }
 0x200   :  { %902 = vmatprep.mubr.bf16.mxu1 %v1434_v54 }
 0x207   :  { %903 = vmatmul.mubr.bf16.gmra.mrb[44].mxu1 %v1436_v56 }
 0x208   :  { %910 = vmatprep.mubr.bf16.mxu1 %v1437_v57 }
 0x20f   :  { %911 = vmatmul.mubr.bf16.gmra.mrb[48].mxu1 %v1439_v58 }
 0x210   :  { %918 = vmatprep.mubr.bf16.mxu1 %v1440_v59 }
 0x217   :  { %919 = vmatmul.mubr.bf16.gmra.mrb[52].mxu1 %v1442_v60 }
 0x218   :  { %926 = vmatprep.mubr.bf16.mxu1 %v1443_v61 }
 0x21f   :  { %927 = vmatmul.mubr.bf16.gmra.mrb[56].mxu1 %v1445_v63 }
 0x220   :  { %934 = vmatprep.mubr.bf16.mxu1 %v1446_v0 }
 0x227   :  { %935 = vmatmul.mubr.bf16.gmra.mrb[60].mxu1 %v1448_v2 }
 0x282   :  { %v1233_v55 = vpop.f32.mrb[0].mxu1 }
 0x283   :  { %v1234_v3 = vpop.f32.mrb[1].mxu1 }
 0x284   :  { %v1235_v6 = vadd.f32 %v1234_v3, %v1233_v55  ;;  %v1236_v7 = vpop.f32.mrb[2].mxu1 }
 0x285   :  { %v1237_v9 = vpop.f32.mrb[3].mxu1 }
 0x286   :  { %v943_v10 = vmax.f32 %v1235_v6, 0.0  ;;  %v1238_v62 = vadd.f32 %v1237_v9, %v1236_v7 }
 0x288   :  { %975 = vst [vmem:[#allocation9] sm:$0xff] %v943_v10  ;;  %v944_v13 = vmax.f32 %v1238_v62, 0.0 }
 0x28a   :  { %976 = vst [vmem:[#allocation9 + $0x8] sm:$0xff] %v944_v13  ;;  %v1239_v14 = vpop.f32.mrb[4].mxu1 }
 0x28b   :  { %v1240_v16 = vpop.f32.mrb[5].mxu1 }
 0x28c   :  { %v1241_v17 = vadd.f32 %v1240_v16, %v1239_v14  ;;  %v1242_v20 = vpop.f32.mrb[6].mxu1 }
 0x28d   :  { %v1243_v21 = vpop.f32.mrb[7].mxu1 }
 0x28e   :  { %v945_v1 = vmax.f32 %v1241_v17, 0.0  ;;  %v1244_v4 = vadd.f32 %v1243_v21, %v1242_v20 }
 0x290   :  { %977 = vst [vmem:[#allocation9 + $0x10] sm:$0xff] %v945_v1  ;;  %v946_v5 = vmax.f32 %v1244_v4, 0.0 }
 0x292   :  { %978 = vst [vmem:[#allocation9 + $0x18] sm:$0xff] %v946_v5  ;;  %v1245_v23 = vpop.f32.mrb[8].mxu1 }
 0x293   :  { %v1246_v24 = vpop.f32.mrb[9].mxu1 }
 0x294   :  { %v1247_v27 = vadd.f32 %v1246_v24, %v1245_v23  ;;  %v1248_v28 = vpop.f32.mrb[10].mxu1 }
 0x295   :  { %v1249_v8 = vpop.f32.mrb[11].mxu1 }
 0x296   :  { %v947_v11 = vmax.f32 %v1247_v27, 0.0  ;;  %v1250_v12 = vadd.f32 %v1249_v8, %v1248_v28 }
 0x298   :  { %979 = vst [vmem:[#allocation9 + $0x20] sm:$0xff] %v947_v11  ;;  %v948_v30 = vmax.f32 %v1250_v12, 0.0 }
 0x29a   :  { %980 = vst [vmem:[#allocation9 + $0x28] sm:$0xff] %v948_v30  ;;  %v1251_v31 = vpop.f32.mrb[12].mxu1 }
 0x29b   :  { %v1252_v34 = vpop.f32.mrb[13].mxu1 }
 0x29c   :  { %v1253_v35 = vadd.f32 %v1252_v34, %v1251_v31  ;;  %v1254_v15 = vpop.f32.mrb[14].mxu1 }
 0x29d   :  { %v1255_v18 = vpop.f32.mrb[15].mxu1 }
 0x29e   :  { %v949_v19 = vmax.f32 %v1253_v35, 0.0  ;;  %v1256_v37 = vadd.f32 %v1255_v18, %v1254_v15 }
 0x2a0   :  { %981 = vst [vmem:[#allocation9 + $0x30] sm:$0xff] %v949_v19  ;;  %v950_v38 = vmax.f32 %v1256_v37, 0.0 }
 0x2a2   :  { %982 = vst [vmem:[#allocation9 + $0x38] sm:$0xff] %v950_v38  ;;  %v1257_v41 = vpop.f32.mrb[16].mxu1 }
 0x2a3   :  { %v1258_v22 = vpop.f32.mrb[17].mxu1 }
 0x2a4   :  { %v1259_v25 = vadd.f32 %v1258_v22, %v1257_v41  ;;  %v1260_v26 = vpop.f32.mrb[18].mxu1 }
 0x2a5   :  { %v1261_v42 = vpop.f32.mrb[19].mxu1 }
 0x2a6   :  { %v951_v29 = vmax.f32 %v1259_v25, 0.0  ;;  %v1262_v32 = vadd.f32 %v1261_v42, %v1260_v26 }
 0x2a8   :  { %983 = vst [vmem:[#allocation9 + $0x40] sm:$0xff] %v951_v29  ;;  %v952_v33 = vmax.f32 %v1262_v32, 0.0 }
 0x2aa   :  { %984 = vst [vmem:[#allocation9 + $0x48] sm:$0xff] %v952_v33  ;;  %v1263_v43 = vpop.f32.mrb[20].mxu1 }
 0x2ab   :  { %v1264_v44 = vpop.f32.mrb[21].mxu1 }
 0x2ac   :  { %v1265_v45 = vadd.f32 %v1264_v44, %v1263_v43  ;;  %v1266_v36 = vpop.f32.mrb[22].mxu1 }
 0x2ad   :  { %v1267_v39 = vpop.f32.mrb[23].mxu1 }
 0x2ae   :  { %v953_v40 = vmax.f32 %v1265_v45, 0.0  ;;  %v1268_v46 = vadd.f32 %v1267_v39, %v1266_v36 }
 0x2b0   :  { %985 = vst [vmem:[#allocation9 + $0x50] sm:$0xff] %v953_v40  ;;  %v954_v47 = vmax.f32 %v1268_v46, 0.0 }
 0x2b2   :  { %986 = vst [vmem:[#allocation9 + $0x58] sm:$0xff] %v954_v47  ;;  %v1269_v48 = vpop.f32.mrb[24].mxu1 }
 0x2b3   :  { %v1270_v49 = vpop.f32.mrb[25].mxu1 }
 0x2b4   :  { %v1271_v50 = vadd.f32 %v1270_v49, %v1269_v48  ;;  %v1272_v51 = vpop.f32.mrb[26].mxu1 }
 0x2b5   :  { %v1273_v52 = vpop.f32.mrb[27].mxu1 }
 0x2b6   :  { %v955_v53 = vmax.f32 %v1271_v50, 0.0  ;;  %v1274_v54 = vadd.f32 %v1273_v52, %v1272_v51 }
 0x2b8   :  { %987 = vst [vmem:[#allocation9 + $0x60] sm:$0xff] %v955_v53  ;;  %v956_v56 = vmax.f32 %v1274_v54, 0.0 }
 0x2ba   :  { %988 = vst [vmem:[#allocation9 + $0x68] sm:$0xff] %v956_v56  ;;  %v1275_v57 = vpop.f32.mrb[28].mxu1 }
 0x2bb   :  { %v1276_v58 = vpop.f32.mrb[29].mxu1 }
 0x2bc   :  { %v1277_v59 = vadd.f32 %v1276_v58, %v1275_v57  ;;  %v1278_v60 = vpop.f32.mrb[30].mxu1 }
 0x2bd   :  { %v1279_v61 = vpop.f32.mrb[31].mxu1 }
 0x2be   :  { %v957_v63 = vmax.f32 %v1277_v59, 0.0  ;;  %v1280_v0 = vadd.f32 %v1279_v61, %v1278_v60 }
 0x2c0   :  { %989 = vst [vmem:[#allocation9 + $0x70] sm:$0xff] %v957_v63  ;;  %v958_v2 = vmax.f32 %v1280_v0, 0.0 }
 0x2c2   :  { %990 = vst [vmem:[#allocation9 + $0x78] sm:$0xff] %v958_v2  ;;  %v1281_v55 = vpop.f32.mrb[32].mxu1 }
 0x2c3   :  { %v1282_v3 = vpop.f32.mrb[33].mxu1 }
 0x2c4   :  { %v1283_v6 = vadd.f32 %v1282_v3, %v1281_v55  ;;  %v1284_v7 = vpop.f32.mrb[34].mxu1 }
 0x2c5   :  { %v1285_v9 = vpop.f32.mrb[35].mxu1 }
 0x2c6   :  { %v959_v10 = vmax.f32 %v1283_v6, 0.0  ;;  %v1286_v62 = vadd.f32 %v1285_v9, %v1284_v7 }
 0x2c8   :  { %991 = vst [vmem:[#allocation9 + $0x80] sm:$0xff] %v959_v10  ;;  %v960_v13 = vmax.f32 %v1286_v62, 0.0 }
 0x2ca   :  { %992 = vst [vmem:[#allocation9 + $0x88] sm:$0xff] %v960_v13  ;;  %v1287_v14 = vpop.f32.mrb[36].mxu1 }
 0x2cb   :  { %v1288_v16 = vpop.f32.mrb[37].mxu1 }
 0x2cc   :  { %v1289_v17 = vadd.f32 %v1288_v16, %v1287_v14  ;;  %v1290_v20 = vpop.f32.mrb[38].mxu1 }
 0x2cd   :  { %v1291_v21 = vpop.f32.mrb[39].mxu1 }
 0x2ce   :  { %v961_v1 = vmax.f32 %v1289_v17, 0.0  ;;  %v1292_v4 = vadd.f32 %v1291_v21, %v1290_v20 }
 0x2d0   :  { %993 = vst [vmem:[#allocation9 + $0x90] sm:$0xff] %v961_v1  ;;  %v962_v5 = vmax.f32 %v1292_v4, 0.0 }
 0x2d2   :  { %994 = vst [vmem:[#allocation9 + $0x98] sm:$0xff] %v962_v5  ;;  %v1293_v23 = vpop.f32.mrb[40].mxu1 }
 0x2d3   :  { %v1294_v24 = vpop.f32.mrb[41].mxu1 }
 0x2d4   :  { %v1295_v27 = vadd.f32 %v1294_v24, %v1293_v23  ;;  %v1296_v28 = vpop.f32.mrb[42].mxu1 }
 0x2d5   :  { %v1297_v8 = vpop.f32.mrb[43].mxu1 }
 0x2d6   :  { %v963_v11 = vmax.f32 %v1295_v27, 0.0  ;;  %v1298_v12 = vadd.f32 %v1297_v8, %v1296_v28 }
 0x2d8   :  { %995 = vst [vmem:[#allocation9 + $0xa0] sm:$0xff] %v963_v11  ;;  %v964_v30 = vmax.f32 %v1298_v12, 0.0 }
 0x2da   :  { %996 = vst [vmem:[#allocation9 + $0xa8] sm:$0xff] %v964_v30  ;;  %v1299_v31 = vpop.f32.mrb[44].mxu1 }
 0x2db   :  { %v1300_v34 = vpop.f32.mrb[45].mxu1 }
 0x2dc   :  { %v1301_v35 = vadd.f32 %v1300_v34, %v1299_v31  ;;  %v1302_v15 = vpop.f32.mrb[46].mxu1 }
 0x2dd   :  { %v1303_v18 = vpop.f32.mrb[47].mxu1 }
 0x2de   :  { %v965_v19 = vmax.f32 %v1301_v35, 0.0  ;;  %v1304_v37 = vadd.f32 %v1303_v18, %v1302_v15 }
 0x2e0   :  { %997 = vst [vmem:[#allocation9 + $0xb0] sm:$0xff] %v965_v19  ;;  %v966_v38 = vmax.f32 %v1304_v37, 0.0 }
 0x2e2   :  { %998 = vst [vmem:[#allocation9 + $0xb8] sm:$0xff] %v966_v38  ;;  %v1305_v41 = vpop.f32.mrb[48].mxu1 }
 0x2e3   :  { %v1306_v22 = vpop.f32.mrb[49].mxu1 }
 0x2e4   :  { %v1307_v25 = vadd.f32 %v1306_v22, %v1305_v41  ;;  %v1308_v26 = vpop.f32.mrb[50].mxu1 }
 0x2e5   :  { %v1309_v42 = vpop.f32.mrb[51].mxu1 }
 0x2e6   :  { %v967_v29 = vmax.f32 %v1307_v25, 0.0  ;;  %v1310_v32 = vadd.f32 %v1309_v42, %v1308_v26 }
 0x2e8   :  { %999 = vst [vmem:[#allocation9 + $0xc0] sm:$0xff] %v967_v29  ;;  %v968_v33 = vmax.f32 %v1310_v32, 0.0 }
 0x2ea   :  { %1000 = vst [vmem:[#allocation9 + $0xc8] sm:$0xff] %v968_v33  ;;  %v1311_v43 = vpop.f32.mrb[52].mxu1 }
 0x2eb   :  { %v1312_v44 = vpop.f32.mrb[53].mxu1 }
 0x2ec   :  { %v1313_v45 = vadd.f32 %v1312_v44, %v1311_v43  ;;  %v1314_v36 = vpop.f32.mrb[54].mxu1 }
 0x2ed   :  { %v1315_v39 = vpop.f32.mrb[55].mxu1 }
 0x2ee   :  { %v969_v40 = vmax.f32 %v1313_v45, 0.0  ;;  %v1316_v46 = vadd.f32 %v1315_v39, %v1314_v36 }
 0x2f0   :  { %1001 = vst [vmem:[#allocation9 + $0xd0] sm:$0xff] %v969_v40  ;;  %v970_v47 = vmax.f32 %v1316_v46, 0.0 }
 0x2f2   :  { %1002 = vst [vmem:[#allocation9 + $0xd8] sm:$0xff] %v970_v47  ;;  %v1317_v48 = vpop.f32.mrb[56].mxu1 }
 0x2f3   :  { %v1318_v49 = vpop.f32.mrb[57].mxu1 }
 0x2f4   :  { %v1319_v50 = vadd.f32 %v1318_v49, %v1317_v48  ;;  %v1320_v51 = vpop.f32.mrb[58].mxu1 }
 0x2f5   :  { %v1321_v52 = vpop.f32.mrb[59].mxu1 }
 0x2f6   :  { %v971_v53 = vmax.f32 %v1319_v50, 0.0  ;;  %v1322_v54 = vadd.f32 %v1321_v52, %v1320_v51 }
 0x2f8   :  { %1003 = vst [vmem:[#allocation9 + $0xe0] sm:$0xff] %v971_v53  ;;  %v972_v56 = vmax.f32 %v1322_v54, 0.0 }
 0x2fa   :  { %1004 = vst [vmem:[#allocation9 + $0xe8] sm:$0xff] %v972_v56  ;;  %v1323_v57 = vpop.f32.mrb[60].mxu1 }
 0x2fb   :  { %v1324_v58 = vpop.f32.mrb[61].mxu1 }
 0x2fc   :  { %v1325_v59 = vadd.f32 %v1324_v58, %v1323_v57  ;;  %v1326_v60 = vpop.f32.mrb[62].mxu1 }
 0x2fd   :  { %v1327_v61 = vpop.f32.mrb[63].mxu1 }
 0x2fe   :  { %v973_v63 = vmax.f32 %v1325_v59, 0.0  ;;  %v1328_v0 = vadd.f32 %v1327_v61, %v1326_v60 }
 0x300   :  { %1005 = vst [vmem:[#allocation9 + $0xf0] sm:$0xff] %v973_v63  ;;  %v974_v2 = vmax.f32 %v1328_v0, 0.0 }
 0x302   :  { %1006 = vst [vmem:[#allocation9 + $0xf8] sm:$0xff] %v974_v2 }
 0x303   :  { %1526 = shalt.err (!%p1523_p0)
}
 0x304   :  { %s1527_s27 = scalar_lea.hbm %s1694_s3, 4096 }
 0x305   :  { %p1528_p1 = scmp.ne.s32.totalorder %s1694_s3, %s1527_s27  ;;  %p1531_p2 = scmp.lt.u32.totalorder %s1527_s27, %s1694_s3 }
 0x307   :  { %p1533_p3 = pnand %p1531_p2, %p1528_p1 }
 0x309   :  { %1536 = shalt.err (!%p1533_p3)
}
 0x30a   :  { %1018 = dma.vmem_to_hbm [thread:$0]  %s1013_s23, 4096, %s1694_s3, [#allocation5], %s1547_s1, %s1547_s1, %s1548_s9  }
 0x30b   :  { %1541 = dma.done.wait [#allocation5], 4096  }
 0x30c   :  { %1542 = vsyncadd [#allocation5], 4294963200 }
 0x30d   :  { %1022 = vsyncpa [#allocation4], 1 }
 0x30e   :  { %1023 = vsyncpa [#allocation7], 1 }
 0x30f   :  { %1024 = vsyncpa [#allocation5], 1 }

// kernel: tpu_custom_call.1
= control target key start
LH: loop header
LB: loop body
LE: loop exit
PB: predicated region body
PF: predicated region fallthrough
CT: control target
= control target key end

     0   :  { %8 = vsyncpa [#allocation4], 0  ;;  %s1691_s0 = inlined_call_operand.hbm [shape: bf16[256,256], index: 0, kind: input, shape index: {}]   ;;  %s1692_s1 = inlined_call_operand.hbm [shape: bf16[256,128], index: 1, kind: input, shape index: {}]   ;;  %s1693_s2 = inlined_call_operand.hbm [shape: bf16[256,256], index: 2, kind: input, shape index: {}]   ;;  %s1694_s3 = inlined_call_operand.hbm [shape: f32[256,128], index: 3, kind: output, shape index: {}]  }
   0x1   :  { %9 = vsyncpa [#allocation7], 0 }
   0x2   :  { %10 = vsyncpa [#allocation5], 0  ;;  %s1543_s12 = smov [#allocation6]   ;;  %s1449_s16 = scalar_lea.hbm %s1692_s1, 2048 }
   0x3   :  { %s28_s13 = sshll.u32 %s1543_s12, 4  ;;  %p1450_p0 = scmp.ne.s32.totalorder %s1692_s1, %s1449_s16  ;;  %s29_s13 = int_to_ptr.vmem [resolvable:$true] %s28_s13 }
   0x4   :  { %p1453_p1 = scmp.lt.u32.totalorder %s1449_s16, %s1692_s1 }
   0x6   :  { %p1455_p2 = pnand %p1453_p1, %p1450_p0 }
   0x8   :  { %1458 = shalt.err (!%p1455_p2)
}
   0x9   :  { %s1459_s21 = scalar_lea.vmem %s29_s13, 2048  ;;  %p1464_p4 = scmp.lt.s32.totalorder %s29_s13, %s29_s13 }
   0xa   :  { %p1460_p3 = scmp.ne.s32.totalorder %s29_s13, %s1459_s21  ;;  %p1465_p5 = scmp.lt.s32.totalorder %s1459_s21, %s1459_s21 }
   0xc   :  { %p1466_p6 = por %p1465_p5, %p1464_p4 }
   0xe   :  { %p1467_p7 = pnand %p1466_p6, %p1460_p3 }
  0x10   :  { %1470 = shalt.err (!%p1467_p7)
}
  0x11   :  { %s1544_s22 = smov 64   ;;  %s1545_s23 = smov 4  }
  0x12   :  { %34 = dma.hbm_to_vmem [thread:$0]  %s1692_s1, 2048, %s29_s13, [#allocation7], %s1544_s22, %s1544_s22, %s1545_s23  }
  0x13   :  { %s1546_s26 = smov [#allocation3]   ;;  %s1471_s30 = scalar_lea.hbm %s1691_s0, 4096 }
  0x14   :  { %s16_s27 = sshll.u32 %s1546_s26, 4  ;;  %p1472_p8 = scmp.ne.s32.totalorder %s1691_s0, %s1471_s30  ;;  %s17_s27 = int_to_ptr.vmem [resolvable:$true] %s16_s27 }
  0x15   :  { %p1475_p9 = scmp.lt.u32.totalorder %s1471_s30, %s1691_s0 }
  0x17   :  { %p1477_p10 = pnand %p1475_p9, %p1472_p8 }
  0x19   :  { %1480 = shalt.err (!%p1477_p10)
}
  0x1a   :  { %s1481_s8 = scalar_lea.vmem %s17_s27, 4096  ;;  %p1486_p12 = scmp.lt.s32.totalorder %s17_s27, %s17_s27 }
  0x1b   :  { %p1482_p11 = scmp.ne.s32.totalorder %s17_s27, %s1481_s8  ;;  %p1487_p13 = scmp.lt.s32.totalorder %s1481_s8, %s1481_s8 }
  0x1d   :  { %p1488_p0 = por %p1487_p13, %p1486_p12 }
  0x1f   :  { %p1489_p1 = pnand %p1488_p0, %p1482_p11 }
  0x21   :  { %1492 = shalt.err (!%p1489_p1)
}
  0x22   :  { %s1547_s1 = smov 128   ;;  %s1548_s9 = smov 8  }
  0x23   :  { %22 = dma.hbm_to_vmem [thread:$0]  %s1691_s0, 4096, %s17_s27, [#allocation4], %s1547_s1, %s1547_s1, %s1548_s9  }
  0x24   :  { %s1549_s12 = smov [#allocation8]   ;;  %s1493_s16 = scalar_lea.hbm %s1693_s2, 4096 }
  0x25   :  { %s40_s13 = sshll.u32 %s1549_s12, 4  ;;  %p1494_p2 = scmp.ne.s32.totalorder %s1693_s2, %s1493_s16  ;;  %s41_s13 = int_to_ptr.vmem [resolvable:$true] %s40_s13 }
  0x26   :  { %p1497_p3 = scmp.lt.u32.totalorder %s1493_s16, %s1693_s2 }
  0x28   :  { %p1499_p4 = pnand %p1497_p3, %p1494_p2 }
  0x2a   :  { %1502 = shalt.err (!%p1499_p4)
}
  0x2b   :  { %s1503_s21 = scalar_lea.vmem %s41_s13, 4096  ;;  %p1508_p6 = scmp.lt.s32.totalorder %s41_s13, %s41_s13 }
  0x2c   :  { %p1504_p5 = scmp.ne.s32.totalorder %s41_s13, %s1503_s21  ;;  %p1509_p7 = scmp.lt.s32.totalorder %s1503_s21, %s1503_s21 }
  0x2e   :  { %p1510_p8 = por %p1509_p7, %p1508_p6 }
  0x30   :  { %p1511_p9 = pnand %p1510_p8, %p1504_p5 }
  0x32   :  { %1514 = shalt.err (!%p1511_p9)
}
  0x33   :  { %46 = dma.hbm_to_vmem [thread:$0]  %s1693_s2, 4096, %s41_s13, [#allocation7], %s1547_s1, %s1547_s1, %s1548_s9  }
  0x34   :  { %1537 = dma.done.wait [#allocation4], 4096  }
  0x35   :  { %1538 = vsyncadd [#allocation4], 4294963200 }
  0x36   :  { %1539 = dma.done.wait [#allocation7], 6144  }
  0x37   :  { %1540 = vsyncadd [#allocation7], 4294961152  ;;  %v1337_v0 = vld [vmem:[#allocation6 + $0x40] sm:$0xff]   ;;  %v1339_v2 = vld [vmem:[#allocation6 + $0x48] sm:$0xff]   ;;  %s1550_s2 = smov [#allocation9]  }
  0x38   :  { %v1338_v1 = vld [vmem:[#allocation6] sm:$0xff]   ;;  %1105 = vmatprep.subr.bf16.mxu0 %v1337_v0  ;;  %v1340_v3 = vld [vmem:[#allocation6 + $0x8] sm:$0xff]   ;;  %v1341_v4 = vld [vmem:[#allocation6 + $0x50] sm:$0xff]   ;;  %s1012_s23 = sshll.u32 %s1550_s2, 4  ;;  %s1013_s23 = int_to_ptr.vmem [resolvable:$true] %s1012_s23 }
  0x39   :  { %1106 = vmatpush3.bf16.msra.mxu0 %v1338_v1  ;;  %v1342_v5 = vld [vmem:[#allocation6 + $0x10] sm:$0xff]   ;;  %v1343_v6 = vld [vmem:[#allocation6 + $0x58] sm:$0xff]   ;;  %v1345_v8 = vld [vmem:[#allocation6 + $0x60] sm:$0xff]   ;;  %s1515_s24 = scalar_lea.vmem %s1013_s23, 4096  ;;  %p1520_p11 = scmp.lt.s32.totalorder %s1013_s23, %s1013_s23 }
  0x3a   :  { %1107 = vmatprep.subr.bf16.mxu0 %v1339_v2  ;;  %v1344_v7 = vld [vmem:[#allocation6 + $0x18] sm:$0xff]   ;;  %v1346_v9 = vld [vmem:[#allocation6 + $0x20] sm:$0xff]   ;;  %v1347_v10 = vld [vmem:[#allocation6 + $0x68] sm:$0xff]   ;;  %p1516_p10 = scmp.ne.s32.totalorder %s1013_s23, %s1515_s24  ;;  %p1521_p12 = scmp.lt.s32.totalorder %s1515_s24, %s1515_s24 }
  0x3b   :  { %v1355_v11 = vld [vmem:[#allocation3 + $0x4] ss:$8 sps:$4 sm:$0xff]   ;;  %v1349_v13 = vld [vmem:[#allocation6 + $0x70] sm:$0xff]   ;;  %v1351_v15 = vld [vmem:[#allocation6 + $0x78] sm:$0xff]  }
  0x3c   :  { %v1348_v12 = vld [vmem:[#allocation6 + $0x28] sm:$0xff]   ;;  %413 = vmatprep.mubr.bf16.mxu0 %v1355_v11  ;;  %v1350_v14 = vld [vmem:[#allocation6 + $0x30] sm:$0xff]   ;;  %v1352_v16 = vld [vmem:[#allocation6 + $0x38] sm:$0xff]   ;;  %p1522_p13 = por %p1521_p12, %p1520_p11 }
  0x3d   :  { %1108 = vmatpush3.bf16.msra.mxu0 %v1340_v3  ;;  %v1353_v17 = vld [vmem:[#allocation3] ss:$8 sps:$4 sm:$0xff]   ;;  %v1356_v18 = vld [vmem:[#allocation3 + $0x14] ss:$8 sps:$4 sm:$0xff]   ;;  %v1358_v19 = vld [vmem:[#allocation3 + $0x10] ss:$8 sps:$4 sm:$0xff]  }
  0x3e   :  { %1109 = vmatprep.subr.bf16.mxu0 %v1341_v4  ;;  %v1359_v20 = vld [vmem:[#allocation3 + $0x24] ss:$8 sps:$4 sm:$0xff]   ;;  %v1361_v21 = vld [vmem:[#allocation3 + $0x20] ss:$8 sps:$4 sm:$0xff]   ;;  %v1362_v22 = vld [vmem:[#allocation3 + $0x34] ss:$8 sps:$4 sm:$0xff]   ;;  %p1523_p0 = pnand %p1522_p13, %p1516_p10 }
  0x3f   :  { %v1364_v23 = vld [vmem:[#allocation3 + $0x30] ss:$8 sps:$4 sm:$0xff]   ;;  %v1365_v24 = vld [vmem:[#allocation3 + $0x44] ss:$8 sps:$4 sm:$0xff]   ;;  %v1367_v25 = vld [vmem:[#allocation3 + $0x40] ss:$8 sps:$4 sm:$0xff]  }
  0x40   :  { %v1368_v26 = vld [vmem:[#allocation3 + $0x54] ss:$8 sps:$4 sm:$0xff]   ;;  %v1370_v27 = vld [vmem:[#allocation3 + $0x50] ss:$8 sps:$4 sm:$0xff]   ;;  %v1371_v28 = vld [vmem:[#allocation3 + $0x64] ss:$8 sps:$4 sm:$0xff]  }
  0x41   :  { %1110 = vmatpush3.bf16.msra.mxu0 %v1342_v5  ;;  %v1373_v29 = vld [vmem:[#allocation3 + $0x60] ss:$8 sps:$4 sm:$0xff]   ;;  %v1374_v30 = vld [vmem:[#allocation3 + $0x74] ss:$8 sps:$4 sm:$0xff]   ;;  %v1376_v31 = vld [vmem:[#allocation3 + $0x70] ss:$8 sps:$4 sm:$0xff]  }
  0x42   :  { %1111 = vmatprep.subr.bf16.mxu0 %v1343_v6  ;;  %v1377_v32 = vld [vmem:[#allocation3 + $0x84] ss:$8 sps:$4 sm:$0xff]   ;;  %v1379_v33 = vld [vmem:[#allocation3 + $0x80] ss:$8 sps:$4 sm:$0xff]   ;;  %v1380_v34 = vld [vmem:[#allocation3 + $0x94] ss:$8 sps:$4 sm:$0xff]  }
  0x43   :  { %v1382_v35 = vld [vmem:[#allocation3 + $0x90] ss:$8 sps:$4 sm:$0xff]   ;;  %v1383_v36 = vld [vmem:[#allocation3 + $0xa4] ss:$8 sps:$4 sm:$0xff]   ;;  %v1385_v37 = vld [vmem:[#allocation3 + $0xa0] ss:$8 sps:$4 sm:$0xff]  }
  0x44   :  { %v1386_v38 = vld [vmem:[#allocation3 + $0xb4] ss:$8 sps:$4 sm:$0xff]   ;;  %v1388_v39 = vld [vmem:[#allocation3 + $0xb0] ss:$8 sps:$4 sm:$0xff]   ;;  %v1389_v40 = vld [vmem:[#allocation3 + $0xc4] ss:$8 sps:$4 sm:$0xff]  }
  0x45   :  { %1112 = vmatpush3.bf16.msra.mxu0 %v1344_v7  ;;  %v1391_v41 = vld [vmem:[#allocation3 + $0xc0] ss:$8 sps:$4 sm:$0xff]   ;;  %v1392_v42 = vld [vmem:[#allocation3 + $0xd4] ss:$8 sps:$4 sm:$0xff]   ;;  %v1394_v43 = vld [vmem:[#allocation3 + $0xd0] ss:$8 sps:$4 sm:$0xff]  }
  0x46   :  { %1113 = vmatprep.subr.bf16.mxu0 %v1345_v8  ;;  %v1395_v44 = vld [vmem:[#allocation3 + $0xe4] ss:$8 sps:$4 sm:$0xff]   ;;  %v1397_v45 = vld [vmem:[#allocation3 + $0xe0] ss:$8 sps:$4 sm:$0xff]   ;;  %v1398_v46 = vld [vmem:[#allocation3 + $0xf4] ss:$8 sps:$4 sm:$0xff]  }
  0x47   :  { %v1400_v47 = vld [vmem:[#allocation3 + $0xf0] ss:$8 sps:$4 sm:$0xff]   ;;  %v1403_v50 = vld [vmem:[#allocation8 + $0x4] ss:$8 sps:$4 sm:$0xff]  }
  0x48   :  { %814 = vmatprep.mubr.bf16.mxu1 %v1403_v50 }
  0x49   :  { %1114 = vmatpush3.bf16.msra.mxu0 %v1346_v9 }
  0x4a   :  { %1115 = vmatprep.subr.bf16.mxu0 %v1347_v10 }
  0x4d   :  { %1116 = vmatpush3.bf16.msra.mxu0 %v1348_v12 }
  0x4e   :  { %1117 = vmatprep.subr.bf16.mxu0 %v1349_v13 }
  0x51   :  { %1118 = vmatpush3.bf16.msra.mxu0 %v1350_v14 }
  0x52   :  { %1119 = vmatprep.subr.bf16.mxu0 %v1351_v15 }
  0x55   :  { %1120 = vmatpush3.bf16.msra.mxu0 %v1352_v16 }
  0x58   :  { %414 = vmatmul.mubr.bf16.vlgmr.msra.gmra.mrb[0].mxu0 %v1353_v17 }
  0x59   :  { %421 = vmatprep.mubr.bf16.mxu0 %v1356_v18 }
  0x60   :  { %422 = vmatmul.mubr.bf16.gmra.mrb[4].mxu0 %v1358_v19 }
  0x61   :  { %429 = vmatprep.mubr.bf16.mxu0 %v1359_v20 }
  0x68   :  { %430 = vmatmul.mubr.bf16.gmra.mrb[8].mxu0 %v1361_v21 }
  0x69   :  { %437 = vmatprep.mubr.bf16.mxu0 %v1362_v22 }
  0x70   :  { %438 = vmatmul.mubr.bf16.gmra.mrb[12].mxu0 %v1364_v23 }
  0x71   :  { %445 = vmatprep.mubr.bf16.mxu0 %v1365_v24 }
  0x78   :  { %446 = vmatmul.mubr.bf16.gmra.mrb[16].mxu0 %v1367_v25 }
  0x79   :  { %453 = vmatprep.mubr.bf16.mxu0 %v1368_v26 }
  0x80   :  { %454 = vmatmul.mubr.bf16.gmra.mrb[20].mxu0 %v1370_v27 }
  0x81   :  { %461 = vmatprep.mubr.bf16.mxu0 %v1371_v28 }
  0x88   :  { %462 = vmatmul.mubr.bf16.gmra.mrb[24].mxu0 %v1373_v29 }
  0x89   :  { %469 = vmatprep.mubr.bf16.mxu0 %v1374_v30 }
  0x90   :  { %470 = vmatmul.mubr.bf16.gmra.mrb[28].mxu0 %v1376_v31 }
  0x91   :  { %477 = vmatprep.mubr.bf16.mxu0 %v1377_v32 }
  0x98   :  { %478 = vmatmul.mubr.bf16.gmra.mrb[32].mxu0 %v1379_v33 }
  0x99   :  { %485 = vmatprep.mubr.bf16.mxu0 %v1380_v34 }
  0xa0   :  { %486 = vmatmul.mubr.bf16.gmra.mrb[36].mxu0 %v1382_v35 }
  0xa1   :  { %493 = vmatprep.mubr.bf16.mxu0 %v1383_v36 }
  0xa8   :  { %494 = vmatmul.mubr.bf16.gmra.mrb[40].mxu0 %v1385_v37 }
  0xa9   :  { %501 = vmatprep.mubr.bf16.mxu0 %v1386_v38 }
  0xb0   :  { %502 = vmatmul.mubr.bf16.gmra.mrb[44].mxu0 %v1388_v39 }
  0xb1   :  { %509 = vmatprep.mubr.bf16.mxu0 %v1389_v40 }
  0xb8   :  { %510 = vmatmul.mubr.bf16.gmra.mrb[48].mxu0 %v1391_v41 }
  0xb9   :  { %517 = vmatprep.mubr.bf16.mxu0 %v1392_v42 }
  0xc0   :  { %518 = vmatmul.mubr.bf16.gmra.mrb[52].mxu0 %v1394_v43 }
  0xc1   :  { %525 = vmatprep.mubr.bf16.mxu0 %v1395_v44 }
  0xc8   :  { %526 = vmatmul.mubr.bf16.gmra.mrb[56].mxu0 %v1397_v45 }
  0xc9   :  { %533 = vmatprep.mubr.bf16.mxu0 %v1398_v46 }
  0xd0   :  { %534 = vmatmul.mubr.bf16.gmra.mrb[60].mxu0 %v1400_v47 }
 0x12b   :  { %v1121_v48 = vpop.f32.mrb[0].mxu0 }
 0x12c   :  { %v1122_v49 = vpop.f32.mrb[1].mxu0 }
 0x12d   :  { %v1613_v51 = vadd.f32 %v1122_v49, %v1121_v48  ;;  %v1124_v52 = vpop.f32.mrb[2].mxu0 }
 0x12e   :  { %v1125_v53 = vpop.f32.mrb[3].mxu0 }
 0x12f   :  { %v1126_v54 = vadd.f32 %v1125_v53, %v1124_v52 }
 0x131   :  { %v542_v55 = vpack.c.bf16 %v1126_v54, %v1613_v51 }
 0x133   :  { %v1127_v56 = vpop.f32.mrb[4].mxu0 }
 0x134   :  { %v1128_v57 = vpop.f32.mrb[5].mxu0 }
 0x135   :  { %v1616_v58 = vadd.f32 %v1128_v57, %v1127_v56  ;;  %v1130_v59 = vpop.f32.mrb[6].mxu0 }
 0x136   :  { %v1131_v60 = vpop.f32.mrb[7].mxu0 }
 0x137   :  { %v1618_v61 = vadd.f32 %v1131_v60, %v1130_v59 }
 0x139   :  { %v543_v62 = vpack.c.bf16 %v1618_v61, %v1616_v58 }
 0x13b   :  { %v1133_v63 = vpop.f32.mrb[8].mxu0 }
 0x13c   :  { %v1134_v0 = vpop.f32.mrb[9].mxu0 }
 0x13d   :  { %v1622_v1 = vadd.f32 %v1134_v0, %v1133_v63  ;;  %v1136_v2 = vpop.f32.mrb[10].mxu0 }
 0x13e   :  { %v1137_v3 = vpop.f32.mrb[11].mxu0 }
 0x13f   :  { %v1624_v4 = vadd.f32 %v1137_v3, %v1136_v2 }
 0x141   :  { %v544_v5 = vpack.c.bf16 %v1624_v4, %v1622_v1 }
 0x143   :  { %v1139_v6 = vpop.f32.mrb[12].mxu0 }
 0x144   :  { %v1140_v7 = vpop.f32.mrb[13].mxu0 }
 0x145   :  { %v1628_v8 = vadd.f32 %v1140_v7, %v1139_v6  ;;  %v1142_v9 = vpop.f32.mrb[14].mxu0 }
 0x146   :  { %v1143_v10 = vpop.f32.mrb[15].mxu0 }
 0x147   :  { %v1630_v11 = vadd.f32 %v1143_v10, %v1142_v9 }
 0x149   :  { %v545_v12 = vpack.c.bf16 %v1630_v11, %v1628_v8 }
 0x14b   :  { %v1145_v13 = vpop.f32.mrb[16].mxu0 }
 0x14c   :  { %v1146_v14 = vpop.f32.mrb[17].mxu0 }
 0x14d   :  { %v1634_v15 = vadd.f32 %v1146_v14, %v1145_v13  ;;  %v1148_v16 = vpop.f32.mrb[18].mxu0 }
 0x14e   :  { %v1149_v17 = vpop.f32.mrb[19].mxu0 }
 0x14f   :  { %v1636_v18 = vadd.f32 %v1149_v17, %v1148_v16 }
 0x151   :  { %v546_v19 = vpack.c.bf16 %v1636_v18, %v1634_v15 }
 0x153   :  { %v1151_v20 = vpop.f32.mrb[20].mxu0 }
 0x154   :  { %v1152_v21 = vpop.f32.mrb[21].mxu0 }
 0x155   :  { %v1640_v22 = vadd.f32 %v1152_v21, %v1151_v20  ;;  %v1154_v23 = vpop.f32.mrb[22].mxu0 }
 0x156   :  { %v1155_v24 = vpop.f32.mrb[23].mxu0 }
 0x157   :  { %v1642_v25 = vadd.f32 %v1155_v24, %v1154_v23 }
 0x159   :  { %v547_v26 = vpack.c.bf16 %v1642_v25, %v1640_v22  ;;  %v1401_v22 = vld [vmem:[#allocation8] ss:$8 sps:$4 sm:$0xff]   ;;  %v1404_v25 = vld [vmem:[#allocation8 + $0x14] ss:$8 sps:$4 sm:$0xff]  }
 0x15b   :  { %v1157_v27 = vpop.f32.mrb[24].mxu0 }
 0x15c   :  { %v1158_v28 = vpop.f32.mrb[25].mxu0 }
 0x15d   :  { %v1646_v29 = vadd.f32 %v1158_v28, %v1157_v27  ;;  %v1160_v30 = vpop.f32.mrb[26].mxu0 }
 0x15e   :  { %v1161_v31 = vpop.f32.mrb[27].mxu0 }
 0x15f   :  { %v1648_v32 = vadd.f32 %v1161_v31, %v1160_v30 }
 0x161   :  { %v548_v33 = vpack.c.bf16 %v1648_v32, %v1646_v29  ;;  %v1409_v29 = vld [vmem:[#allocation8 + $0x20] ss:$8 sps:$4 sm:$0xff]   ;;  %v1410_v32 = vld [vmem:[#allocation8 + $0x34] ss:$8 sps:$4 sm:$0xff]  }
 0x163   :  { %v1163_v34 = vpop.f32.mrb[28].mxu0 }
 0x164   :  { %v1164_v35 = vpop.f32.mrb[29].mxu0 }
 0x165   :  { %v1652_v36 = vadd.f32 %v1164_v35, %v1163_v34  ;;  %v1166_v37 = vpop.f32.mrb[30].mxu0 }
 0x166   :  { %v1167_v38 = vpop.f32.mrb[31].mxu0 }
 0x167   :  { %v1654_v39 = vadd.f32 %v1167_v38, %v1166_v37 }
 0x169   :  { %v549_v40 = vpack.c.bf16 %v1654_v39, %v1652_v36  ;;  %v1418_v36 = vld [vmem:[#allocation8 + $0x50] ss:$8 sps:$4 sm:$0xff]   ;;  %v1419_v39 = vld [vmem:[#allocation8 + $0x64] ss:$8 sps:$4 sm:$0xff]  }
 0x16b   :  { %v1169_v41 = vpop.f32.mrb[32].mxu0 }
 0x16c   :  { %v1170_v42 = vpop.f32.mrb[33].mxu0 }
 0x16d   :  { %v1171_v43 = vadd.f32 %v1170_v42, %v1169_v41  ;;  %v1172_v44 = vpop.f32.mrb[34].mxu0  ;;  %v1407_v42 = vld [vmem:[#allocation8 + $0x24] ss:$8 sps:$4 sm:$0xff]  }
 0x16e   :  { %v1173_v45 = vpop.f32.mrb[35].mxu0 }
 0x16f   :  { %v1174_v46 = vadd.f32 %v1173_v45, %v1172_v44  ;;  %v1415_v44 = vld [vmem:[#allocation8 + $0x40] ss:$8 sps:$4 sm:$0xff]   ;;  %v1416_v45 = vld [vmem:[#allocation8 + $0x54] ss:$8 sps:$4 sm:$0xff]  }
 0x171   :  { %v550_v47 = vpack.c.bf16 %v1174_v46, %v1171_v43  ;;  %v1413_v43 = vld [vmem:[#allocation8 + $0x44] ss:$8 sps:$4 sm:$0xff]   ;;  %v1422_v46 = vld [vmem:[#allocation8 + $0x74] ss:$8 sps:$4 sm:$0xff]  }
 0x173   :  { %v1175_v48 = vpop.f32.mrb[36].mxu0  ;;  %1217 = vmatprep.subr.bf16.mxu1 %v550_v47  ;;  %v1424_v47 = vld [vmem:[#allocation8 + $0x70] ss:$8 sps:$4 sm:$0xff]  }
 0x174   :  { %v1176_v49 = vpop.f32.mrb[37].mxu0  ;;  %1218 = vmatpush3.bf16.msra.mxu1 %v542_v55 }
 0x175   :  { %v1177_v50 = vadd.f32 %v1176_v49, %v1175_v48  ;;  %v1178_v51 = vpop.f32.mrb[38].mxu0  ;;  %v1425_v48 = vld [vmem:[#allocation8 + $0x84] ss:$8 sps:$4 sm:$0xff]   ;;  %v1427_v49 = vld [vmem:[#allocation8 + $0x80] ss:$8 sps:$4 sm:$0xff]  }
 0x176   :  { %v1179_v52 = vpop.f32.mrb[39].mxu0 }
 0x177   :  { %v1180_v53 = vadd.f32 %v1179_v52, %v1178_v51  ;;  %v1430_v51 = vld [vmem:[#allocation8 + $0x90] ss:$8 sps:$4 sm:$0xff]   ;;  %v1431_v52 = vld [vmem:[#allocation8 + $0xa4] ss:$8 sps:$4 sm:$0xff]  }
 0x179   :  { %v551_v54 = vpack.c.bf16 %v1180_v53, %v1177_v50  ;;  %v1428_v50 = vld [vmem:[#allocation8 + $0x94] ss:$8 sps:$4 sm:$0xff]   ;;  %v1433_v53 = vld [vmem:[#allocation8 + $0xa0] ss:$8 sps:$4 sm:$0xff]  }
 0x17b   :  { %v1181_v56 = vpop.f32.mrb[40].mxu0  ;;  %1219 = vmatprep.subr.bf16.mxu1 %v551_v54  ;;  %v1434_v54 = vld [vmem:[#allocation8 + $0xb4] ss:$8 sps:$4 sm:$0xff]  }
 0x17c   :  { %v1182_v57 = vpop.f32.mrb[41].mxu0  ;;  %1220 = vmatpush3.bf16.msra.mxu1 %v543_v62 }
 0x17d   :  { %v1183_v58 = vadd.f32 %v1182_v57, %v1181_v56  ;;  %v1184_v59 = vpop.f32.mrb[42].mxu0  ;;  %v1436_v56 = vld [vmem:[#allocation8 + $0xb0] ss:$8 sps:$4 sm:$0xff]   ;;  %v1437_v57 = vld [vmem:[#allocation8 + $0xc4] ss:$8 sps:$4 sm:$0xff]  }
 0x17e   :  { %v1185_v60 = vpop.f32.mrb[43].mxu0 }
 0x17f   :  { %v1186_v61 = vadd.f32 %v1185_v60, %v1184_v59  ;;  %v1440_v59 = vld [vmem:[#allocation8 + $0xd4] ss:$8 sps:$4 sm:$0xff]   ;;  %v1442_v60 = vld [vmem:[#allocation8 + $0xd0] ss:$8 sps:$4 sm:$0xff]  }
 0x181   :  { %v552_v63 = vpack.c.bf16 %v1186_v61, %v1183_v58  ;;  %v1439_v58 = vld [vmem:[#allocation8 + $0xc0] ss:$8 sps:$4 sm:$0xff]   ;;  %v1443_v61 = vld [vmem:[#allocation8 + $0xe4] ss:$8 sps:$4 sm:$0xff]  }
 0x183   :  { %v1187_v0 = vpop.f32.mrb[44].mxu0  ;;  %1221 = vmatprep.subr.bf16.mxu1 %v552_v63  ;;  %v1445_v63 = vld [vmem:[#allocation8 + $0xe0] ss:$8 sps:$4 sm:$0xff]  }
 0x184   :  { %v1188_v2 = vpop.f32.mrb[45].mxu0  ;;  %1222 = vmatpush3.bf16.msra.mxu1 %v544_v5 }
 0x185   :  { %v1189_v55 = vadd.f32 %v1188_v2, %v1187_v0  ;;  %v1190_v3 = vpop.f32.mrb[46].mxu0  ;;  %v1446_v0 = vld [vmem:[#allocation8 + $0xf4] ss:$8 sps:$4 sm:$0xff]   ;;  %v1448_v2 = vld [vmem:[#allocation8 + $0xf0] ss:$8 sps:$4 sm:$0xff]  }
 0x186   :  { %v1191_v6 = vpop.f32.mrb[47].mxu0 }
 0x187   :  { %v1192_v7 = vadd.f32 %v1191_v6, %v1190_v3 }
 0x189   :  { %v553_v9 = vpack.c.bf16 %v1192_v7, %v1189_v55 }
 0x18b   :  { %v1193_v10 = vpop.f32.mrb[48].mxu0  ;;  %1223 = vmatprep.subr.bf16.mxu1 %v553_v9 }
 0x18c   :  { %v1194_v62 = vpop.f32.mrb[49].mxu0  ;;  %1224 = vmatpush3.bf16.msra.mxu1 %v545_v12 }
 0x18d   :  { %v1195_v13 = vadd.f32 %v1194_v62, %v1193_v10  ;;  %v1196_v14 = vpop.f32.mrb[50].mxu0 }
 0x18e   :  { %v1197_v16 = vpop.f32.mrb[51].mxu0 }
 0x18f   :  { %v1198_v17 = vadd.f32 %v1197_v16, %v1196_v14 }
 0x191   :  { %v554_v20 = vpack.c.bf16 %v1198_v17, %v1195_v13 }
 0x193   :  { %v1199_v21 = vpop.f32.mrb[52].mxu0  ;;  %1225 = vmatprep.subr.bf16.mxu1 %v554_v20 }
 0x194   :  { %v1200_v1 = vpop.f32.mrb[53].mxu0  ;;  %1226 = vmatpush3.bf16.msra.mxu1 %v546_v19 }
 0x195   :  { %v1201_v4 = vadd.f32 %v1200_v1, %v1199_v21  ;;  %v1202_v5 = vpop.f32.mrb[54].mxu0 }
 0x196   :  { %v1203_v23 = vpop.f32.mrb[55].mxu0 }
 0x197   :  { %v1204_v24 = vadd.f32 %v1203_v23, %v1202_v5 }
 0x199   :  { %v555_v27 = vpack.c.bf16 %v1204_v24, %v1201_v4 }
 0x19b   :  { %v1205_v28 = vpop.f32.mrb[56].mxu0  ;;  %1227 = vmatprep.subr.bf16.mxu1 %v555_v27 }
 0x19c   :  { %v1206_v8 = vpop.f32.mrb[57].mxu0  ;;  %1228 = vmatpush3.bf16.msra.mxu1 %v547_v26  ;;  %v1406_v26 = vld [vmem:[#allocation8 + $0x10] ss:$8 sps:$4 sm:$0xff]  }
 0x19d   :  { %v1207_v11 = vadd.f32 %v1206_v8, %v1205_v28  ;;  %v1208_v12 = vpop.f32.mrb[58].mxu0 }
 0x19e   :  { %v1209_v30 = vpop.f32.mrb[59].mxu0 }
 0x19f   :  { %v1210_v31 = vadd.f32 %v1209_v30, %v1208_v12 }
 0x1a1   :  { %v556_v34 = vpack.c.bf16 %v1210_v31, %v1207_v11 }
 0x1a3   :  { %v1211_v35 = vpop.f32.mrb[60].mxu0  ;;  %1229 = vmatprep.subr.bf16.mxu1 %v556_v34 }
 0x1a4   :  { %v1212_v15 = vpop.f32.mrb[61].mxu0  ;;  %1230 = vmatpush3.bf16.msra.mxu1 %v548_v33  ;;  %v1412_v33 = vld [vmem:[#allocation8 + $0x30] ss:$8 sps:$4 sm:$0xff]  }
 0x1a5   :  { %v1213_v18 = vadd.f32 %v1212_v15, %v1211_v35  ;;  %v1214_v19 = vpop.f32.mrb[62].mxu0 }
 0x1a6   :  { %v1215_v37 = vpop.f32.mrb[63].mxu0 }
 0x1a7   :  { %v1216_v38 = vadd.f32 %v1215_v37, %v1214_v19 }
 0x1a9   :  { %v557_v41 = vpack.c.bf16 %v1216_v38, %v1213_v18 }
 0x1ab   :  { %1231 = vmatprep.subr.bf16.mxu1 %v557_v41 }
 0x1ac   :  { %1232 = vmatpush3.bf16.msra.mxu1 %v549_v40  ;;  %v1421_v40 = vld [vmem:[#allocation8 + $0x60] ss:$8 sps:$4 sm:$0xff]  }
 0x1af   :  { %815 = vmatmul.mubr.bf16.vlgmr.msra.gmra.mrb[0].mxu1 %v1401_v22 }
 0x1b0   :  { %822 = vmatprep.mubr.bf16.mxu1 %v1404_v25 }
 0x1b7   :  { %823 = vmatmul.mubr.bf16.gmra.mrb[4].mxu1 %v1406_v26 }
 0x1b8   :  { %830 = vmatprep.mubr.bf16.mxu1 %v1407_v42 }
 0x1bf   :  { %831 = vmatmul.mubr.bf16.gmra.mrb[8].mxu1 %v1409_v29 }
 0x1c0   :  { %838 = vmatprep.mubr.bf16.mxu1 %v1410_v32 }
 0x1c7   :  { %839 = vmatmul.mubr.bf16.gmra.mrb[12].mxu1 %v1412_v33 }
 0x1c8   :  { %846 = vmatprep.mubr.bf16.mxu1 %v1413_v43 }
 0x1cf   :  { %847 = vmatmul.mubr.bf16.gmra.mrb[16].mxu1 %v1415_v44 }
 0x1d0   :  { %854 = vmatprep.mubr.bf16.mxu1 %v1416_v45 }
 0x1d7   :  { %855 = vmatmul.mubr.bf16.gmra.mrb[20].mxu1 %v1418_v36 }
 0x1d8   :  { %862 = vmatprep.mubr.bf16.mxu1 %v1419_v39 }
 0x1df   :  { %863 = vmatmul.mubr.bf16.gmra.mrb[24].mxu1 %v1421_v40 }
 0x1e0   :  { %870 = vmatprep.mubr.bf16.mxu1 %v1422_v46 }
 0x1e7   :  { %871 = vmatmul.mubr.bf16.gmra.mrb[28].mxu1 %v1424_v47 }
 0x1e8   :  { %878 = vmatprep.mubr.bf16.mxu1 %v1425_v48 }
 0x1ef   :  { %879 = vmatmul.mubr.bf16.gmra.mrb[32].mxu1 %v1427_v49 }
 0x1f0   :  { %886 = vmatprep.mubr.bf16.mxu1 %v1428_v50 }
 0x1f7   :  { %887 = vmatmul.mubr.bf16.gmra.mrb[36].mxu1 %v1430_v51 }
 0x1f8   :  { %894 = vmatprep.mubr.bf16.mxu1 %v1431_v52 }
 0x1ff   :  { %895 = vmatmul.mubr.bf16.gmra.mrb[40].mxu1 %v1433_v53 }
 0x200   :  { %902 = vmatprep.mubr.bf16.mxu1 %v1434_v54 }
 0x207   :  { %903 = vmatmul.mubr.bf16.gmra.mrb[44].mxu1 %v1436_v56 }
 0x208   :  { %910 = vmatprep.mubr.bf16.mxu1 %v1437_v57 }
 0x20f   :  { %911 = vmatmul.mubr.bf16.gmra.mrb[48].mxu1 %v1439_v58 }
 0x210   :  { %918 = vmatprep.mubr.bf16.mxu1 %v1440_v59 }
 0x217   :  { %919 = vmatmul.mubr.bf16.gmra.mrb[52].mxu1 %v1442_v60 }
 0x218   :  { %926 = vmatprep.mubr.bf16.mxu1 %v1443_v61 }
 0x21f   :  { %927 = vmatmul.mubr.bf16.gmra.mrb[56].mxu1 %v1445_v63 }
 0x220   :  { %934 = vmatprep.mubr.bf16.mxu1 %v1446_v0 }
 0x227   :  { %935 = vmatmul.mubr.bf16.gmra.mrb[60].mxu1 %v1448_v2 }
 0x282   :  { %v1233_v55 = vpop.f32.mrb[0].mxu1 }
 0x283   :  { %v1234_v3 = vpop.f32.mrb[1].mxu1 }
 0x284   :  { %v1235_v6 = vadd.f32 %v1234_v3, %v1233_v55  ;;  %v1236_v7 = vpop.f32.mrb[2].mxu1 }
 0x285   :  { %v1237_v9 = vpop.f32.mrb[3].mxu1 }
 0x286   :  { %v943_v10 = vmax.f32 %v1235_v6, 0.0  ;;  %v1238_v62 = vadd.f32 %v1237_v9, %v1236_v7 }
 0x288   :  { %975 = vst [vmem:[#allocation9] sm:$0xff] %v943_v10  ;;  %v944_v13 = vmax.f32 %v1238_v62, 0.0 }
 0x28a   :  { %976 = vst [vmem:[#allocation9 + $0x8] sm:$0xff] %v944_v13  ;;  %v1239_v14 = vpop.f32.mrb[4].mxu1 }
 0x28b   :  { %v1240_v16 = vpop.f32.mrb[5].mxu1 }
 0x28c   :  { %v1241_v17 = vadd.f32 %v1240_v16, %v1239_v14  ;;  %v1242_v20 = vpop.f32.mrb[6].mxu1 }
 0x28d   :  { %v1243_v21 = vpop.f32.mrb[7].mxu1 }
 0x28e   :  { %v945_v1 = vmax.f32 %v1241_v17, 0.0  ;;  %v1244_v4 = vadd.f32 %v1243_v21, %v1242_v20 }
 0x290   :  { %977 = vst [vmem:[#allocation9 + $0x10] sm:$0xff] %v945_v1  ;;  %v946_v5 = vmax.f32 %v1244_v4, 0.0 }
 0x292   :  { %978 = vst [vmem:[#allocation9 + $0x18] sm:$0xff] %v946_v5  ;;  %v1245_v23 = vpop.f32.mrb[8].mxu1 }
 0x293   :  { %v1246_v24 = vpop.f32.mrb[9].mxu1 }
 0x294   :  { %v1247_v27 = vadd.f32 %v1246_v24, %v1245_v23  ;;  %v1248_v28 = vpop.f32.mrb[10].mxu1 }
 0x295   :  { %v1249_v8 = vpop.f32.mrb[11].mxu1 }
 0x296   :  { %v947_v11 = vmax.f32 %v1247_v27, 0.0  ;;  %v1250_v12 = vadd.f32 %v1249_v8, %v1248_v28 }
 0x298   :  { %979 = vst [vmem:[#allocation9 + $0x20] sm:$0xff] %v947_v11  ;;  %v948_v30 = vmax.f32 %v1250_v12, 0.0 }
 0x29a   :  { %980 = vst [vmem:[#allocation9 + $0x28] sm:$0xff] %v948_v30  ;;  %v1251_v31 = vpop.f32.mrb[12].mxu1 }
 0x29b   :  { %v1252_v34 = vpop.f32.mrb[13].mxu1 }
 0x29c   :  { %v1253_v35 = vadd.f32 %v1252_v34, %v1251_v31  ;;  %v1254_v15 = vpop.f32.mrb[14].mxu1 }
 0x29d   :  { %v1255_v18 = vpop.f32.mrb[15].mxu1 }
 0x29e   :  { %v949_v19 = vmax.f32 %v1253_v35, 0.0  ;;  %v1256_v37 = vadd.f32 %v1255_v18, %v1254_v15 }
 0x2a0   :  { %981 = vst [vmem:[#allocation9 + $0x30] sm:$0xff] %v949_v19  ;;  %v950_v38 = vmax.f32 %v1256_v37, 0.0 }
 0x2a2   :  { %982 = vst [vmem:[#allocation9 + $0x38] sm:$0xff] %v950_v38  ;;  %v1257_v41 = vpop.f32.mrb[16].mxu1 }
 0x2a3   :  { %v1258_v22 = vpop.f32.mrb[17].mxu1 }
 0x2a4   :  { %v1259_v25 = vadd.f32 %v1258_v22, %v1257_v41  ;;  %v1260_v26 = vpop.f32.mrb[18].mxu1 }
 0x2a5   :  { %v1261_v42 = vpop.f32.mrb[19].mxu1 }
 0x2a6   :  { %v951_v29 = vmax.f32 %v1259_v25, 0.0  ;;  %v1262_v32 = vadd.f32 %v1261_v42, %v1260_v26 }
 0x2a8   :  { %983 = vst [vmem:[#allocation9 + $0x40] sm:$0xff] %v951_v29  ;;  %v952_v33 = vmax.f32 %v1262_v32, 0.0 }
 0x2aa   :  { %984 = vst [vmem:[#allocation9 + $0x48] sm:$0xff] %v952_v33  ;;  %v1263_v43 = vpop.f32.mrb[20].mxu1 }
 0x2ab   :  { %v1264_v44 = vpop.f32.mrb[21].mxu1 }
 0x2ac   :  { %v1265_v45 = vadd.f32 %v1264_v44, %v1263_v43  ;;  %v1266_v36 = vpop.f32.mrb[22].mxu1 }
 0x2ad   :  { %v1267_v39 = vpop.f32.mrb[23].mxu1 }
 0x2ae   :  { %v953_v40 = vmax.f32 %v1265_v45, 0.0  ;;  %v1268_v46 = vadd.f32 %v1267_v39, %v1266_v36 }
 0x2b0   :  { %985 = vst [vmem:[#allocation9 + $0x50] sm:$0xff] %v953_v40  ;;  %v954_v47 = vmax.f32 %v1268_v46, 0.0 }
 0x2b2   :  { %986 = vst [vmem:[#allocation9 + $0x58] sm:$0xff] %v954_v47  ;;  %v1269_v48 = vpop.f32.mrb[24].mxu1 }
 0x2b3   :  { %v1270_v49 = vpop.f32.mrb[25].mxu1 }
 0x2b4   :  { %v1271_v50 = vadd.f32 %v1270_v49, %v1269_v48  ;;  %v1272_v51 = vpop.f32.mrb[26].mxu1 }
 0x2b5   :  { %v1273_v52 = vpop.f32.mrb[27].mxu1 }
 0x2b6   :  { %v955_v53 = vmax.f32 %v1271_v50, 0.0  ;;  %v1274_v54 = vadd.f32 %v1273_v52, %v1272_v51 }
 0x2b8   :  { %987 = vst [vmem:[#allocation9 + $0x60] sm:$0xff] %v955_v53  ;;  %v956_v56 = vmax.f32 %v1274_v54, 0.0 }
 0x2ba   :  { %988 = vst [vmem:[#allocation9 + $0x68] sm:$0xff] %v956_v56  ;;  %v1275_v57 = vpop.f32.mrb[28].mxu1 }
 0x2bb   :  { %v1276_v58 = vpop.f32.mrb[29].mxu1 }
 0x2bc   :  { %v1277_v59 = vadd.f32 %v1276_v58, %v1275_v57  ;;  %v1278_v60 = vpop.f32.mrb[30].mxu1 }
 0x2bd   :  { %v1279_v61 = vpop.f32.mrb[31].mxu1 }
 0x2be   :  { %v957_v63 = vmax.f32 %v1277_v59, 0.0  ;;  %v1280_v0 = vadd.f32 %v1279_v61, %v1278_v60 }
 0x2c0   :  { %989 = vst [vmem:[#allocation9 + $0x70] sm:$0xff] %v957_v63  ;;  %v958_v2 = vmax.f32 %v1280_v0, 0.0 }
 0x2c2   :  { %990 = vst [vmem:[#allocation9 + $0x78] sm:$0xff] %v958_v2  ;;  %v1281_v55 = vpop.f32.mrb[32].mxu1 }
 0x2c3   :  { %v1282_v3 = vpop.f32.mrb[33].mxu1 }
 0x2c4   :  { %v1283_v6 = vadd.f32 %v1282_v3, %v1281_v55  ;;  %v1284_v7 = vpop.f32.mrb[34].mxu1 }
 0x2c5   :  { %v1285_v9 = vpop.f32.mrb[35].mxu1 }
 0x2c6   :  { %v959_v10 = vmax.f32 %v1283_v6, 0.0  ;;  %v1286_v62 = vadd.f32 %v1285_v9, %v1284_v7 }
 0x2c8   :  { %991 = vst [vmem:[#allocation9 + $0x80] sm:$0xff] %v959_v10  ;;  %v960_v13 = vmax.f32 %v1286_v62, 0.0 }
 0x2ca   :  { %992 = vst [vmem:[#allocation9 + $0x88] sm:$0xff] %v960_v13  ;;  %v1287_v14 = vpop.f32.mrb[36].mxu1 }
 0x2cb   :  { %v1288_v16 = vpop.f32.mrb[37].mxu1 }
 0x2cc   :  { %v1289_v17 = vadd.f32 %v1288_v16, %v1287_v14  ;;  %v1290_v20 = vpop.f32.mrb[38].mxu1 }
 0x2cd   :  { %v1291_v21 = vpop.f32.mrb[39].mxu1 }
 0x2ce   :  { %v961_v1 = vmax.f32 %v1289_v17, 0.0  ;;  %v1292_v4 = vadd.f32 %v1291_v21, %v1290_v20 }
 0x2d0   :  { %993 = vst [vmem:[#allocation9 + $0x90] sm:$0xff] %v961_v1  ;;  %v962_v5 = vmax.f32 %v1292_v4, 0.0 }
 0x2d2   :  { %994 = vst [vmem:[#allocation9 + $0x98] sm:$0xff] %v962_v5  ;;  %v1293_v23 = vpop.f32.mrb[40].mxu1 }
 0x2d3   :  { %v1294_v24 = vpop.f32.mrb[41].mxu1 }
 0x2d4   :  { %v1295_v27 = vadd.f32 %v1294_v24, %v1293_v23  ;;  %v1296_v28 = vpop.f32.mrb[42].mxu1 }
 0x2d5   :  { %v1297_v8 = vpop.f32.mrb[43].mxu1 }
 0x2d6   :  { %v963_v11 = vmax.f32 %v1295_v27, 0.0  ;;  %v1298_v12 = vadd.f32 %v1297_v8, %v1296_v28 }
 0x2d8   :  { %995 = vst [vmem:[#allocation9 + $0xa0] sm:$0xff] %v963_v11  ;;  %v964_v30 = vmax.f32 %v1298_v12, 0.0 }
 0x2da   :  { %996 = vst [vmem:[#allocation9 + $0xa8] sm:$0xff] %v964_v30  ;;  %v1299_v31 = vpop.f32.mrb[44].mxu1 }
 0x2db   :  { %v1300_v34 = vpop.f32.mrb[45].mxu1 }
 0x2dc   :  { %v1301_v35 = vadd.f32 %v1300_v34, %v1299_v31  ;;  %v1302_v15 = vpop.f32.mrb[46].mxu1 }
 0x2dd   :  { %v1303_v18 = vpop.f32.mrb[47].mxu1 }
 0x2de   :  { %v965_v19 = vmax.f32 %v1301_v35, 0.0  ;;  %v1304_v37 = vadd.f32 %v1303_v18, %v1302_v15 }
 0x2e0   :  { %997 = vst [vmem:[#allocation9 + $0xb0] sm:$0xff] %v965_v19  ;;  %v966_v38 = vmax.f32 %v1304_v37, 0.0 }
 0x2e2   :  { %998 = vst [vmem:[#allocation9 + $0xb8] sm:$0xff] %v966_v38  ;;  %v1305_v41 = vpop.f32.mrb[48].mxu1 }
 0x2e3   :  { %v1306_v22 = vpop.f32.mrb[49].mxu1 }
 0x2e4   :  { %v1307_v25 = vadd.f32 %v1306_v22, %v1305_v41  ;;  %v1308_v26 = vpop.f32.mrb[50].mxu1 }
 0x2e5   :  { %v1309_v42 = vpop.f32.mrb[51].mxu1 }
 0x2e6   :  { %v967_v29 = vmax.f32 %v1307_v25, 0.0  ;;  %v1310_v32 = vadd.f32 %v1309_v42, %v1308_v26 }
 0x2e8   :  { %999 = vst [vmem:[#allocation9 + $0xc0] sm:$0xff] %v967_v29  ;;  %v968_v33 = vmax.f32 %v1310_v32, 0.0 }
 0x2ea   :  { %1000 = vst [vmem:[#allocation9 + $0xc8] sm:$0xff] %v968_v33  ;;  %v1311_v43 = vpop.f32.mrb[52].mxu1 }
 0x2eb   :  { %v1312_v44 = vpop.f32.mrb[53].mxu1 }
 0x2ec   :  { %v1313_v45 = vadd.f32 %v1312_v44, %v1311_v43  ;;  %v1314_v36 = vpop.f32.mrb[54].mxu1 }
 0x2ed   :  { %v1315_v39 = vpop.f32.mrb[55].mxu1 }
 0x2ee   :  { %v969_v40 = vmax.f32 %v1313_v45, 0.0  ;;  %v1316_v46 = vadd.f32 %v1315_v39, %v1314_v36 }
 0x2f0   :  { %1001 = vst [vmem:[#allocation9 + $0xd0] sm:$0xff] %v969_v40  ;;  %v970_v47 = vmax.f32 %v1316_v46, 0.0 }
 0x2f2   :  { %1002 = vst [vmem:[#allocation9 + $0xd8] sm:$0xff] %v970_v47  ;;  %v1317_v48 = vpop.f32.mrb[56].mxu1 }
 0x2f3   :  { %v1318_v49 = vpop.f32.mrb[57].mxu1 }
 0x2f4   :  { %v1319_v50 = vadd.f32 %v1318_v49, %v1317_v48  ;;  %v1320_v51 = vpop.f32.mrb[58].mxu1 }
 0x2f5   :  { %v1321_v52 = vpop.f32.mrb[59].mxu1 }
 0x2f6   :  { %v971_v53 = vmax.f32 %v1319_v50, 0.0  ;;  %v1322_v54 = vadd.f32 %v1321_v52, %v1320_v51 }
 0x2f8   :  { %1003 = vst [vmem:[#allocation9 + $0xe0] sm:$0xff] %v971_v53  ;;  %v972_v56 = vmax.f32 %v1322_v54, 0.0 }
 0x2fa   :  { %1004 = vst [vmem:[#allocation9 + $0xe8] sm:$0xff] %v972_v56  ;;  %v1323_v57 = vpop.f32.mrb[60].mxu1 }
 0x2fb   :  { %v1324_v58 = vpop.f32.mrb[61].mxu1 }
 0x2fc   :  { %v1325_v59 = vadd.f32 %v1324_v58, %v1323_v57  ;;  %v1326_v60 = vpop.f32.mrb[62].mxu1 }
 0x2fd   :  { %v1327_v61 = vpop.f32.mrb[63].mxu1 }
 0x2fe   :  { %v973_v63 = vmax.f32 %v1325_v59, 0.0  ;;  %v1328_v0 = vadd.f32 %v1327_v61, %v1326_v60 }
 0x300   :  { %1005 = vst [vmem:[#allocation9 + $0xf0] sm:$0xff] %v973_v63  ;;  %v974_v2 = vmax.f32 %v1328_v0, 0.0 }
 0x302   :  { %1006 = vst [vmem:[#allocation9 + $0xf8] sm:$0xff] %v974_v2 }
 0x303   :  { %1526 = shalt.err (!%p1523_p0)
}
 0x304   :  { %s1527_s27 = scalar_lea.hbm %s1694_s3, 4096 }
 0x305   :  { %p1528_p1 = scmp.ne.s32.totalorder %s1694_s3, %s1527_s27  ;;  %p1531_p2 = scmp.lt.u32.totalorder %s1527_s27, %s1694_s3 }
 0x307   :  { %p1533_p3 = pnand %p1531_p2, %p1528_p1 }
 0x309   :  { %1536 = shalt.err (!%p1533_p3)
}
 0x30a   :  { %1018 = dma.vmem_to_hbm [thread:$0]  %s1013_s23, 4096, %s1694_s3, [#allocation5], %s1547_s1, %s1547_s1, %s1548_s9  }
 0x30b   :  { %1541 = dma.done.wait [#allocation5], 4096  }
 0x30c   :  { %1542 = vsyncadd [#allocation5], 4294963200 }
 0x30d   :  { %1022 = vsyncpa [#allocation4], 1 }
 0x30e   :  { %1023 = vsyncpa [#allocation7], 1 }
 0x30f   :  { %1024 = vsyncpa [#allocation5], 1 }

</bundles_post_ra>
